<compile_context>
chip_gen: v5e
topology: v5e:2x2
jax: 0.10.0
libtpu: 0.0.40
codegen_flags: <defaults>
</compile_context>

<pallas_src>
import functools

import jax
import jax.numpy as jnp
from jax import lax
from jax.experimental import pallas as pl
from jax.experimental.pallas import tpu as pltpu


def _round_up(x, m):
    return ((x + m - 1) // m) * m


def _num_tensorcores():
    """Best-effort TensorCore count per device (v7x/v4/v5p: 2; v5e/v6e: 1)."""
    try:
        kind = jax.devices()[0].device_kind.lower()
    except Exception:
        return 1
    if "lite" in kind or "v5e" in kind or "v6e" in kind:
        return 1
    if "v7" in kind or "tpu7" in kind or "v4" in kind or "v5p" in kind:
        return 2
    return 1


def _vmem_capacity_bytes():
    try:
        return int(pltpu.get_tpu_info().vmem_capacity_bytes)
    except Exception:
        return 64 << 20          # conservative: v7x per-TensorCore VMEM


def _choose_batch_tile(batch, per_b_bytes, fixed_bytes, n_cores, vmem_budget):
    """Pick the batch tile TB (multiple of 8) and padded batch B_pad.

    v5e/v6e (1 TensorCore): fewest grid steps that fit the VMEM budget -- each
    extra step is ~0.35us (~600 cycles) of pure overhead and buys nothing.
    v7x (2 TensorCores): round the step count up to a multiple of 2 so both
    cores get work under dimension_semantics=("parallel",).
    """
    b8 = _round_up(max(batch, 1), 8)
    avail = max(vmem_budget - fixed_bytes, 8 * per_b_bytes)
    tb_cap = max(8, min(b8, (avail // max(per_b_bytes, 1)) // 8 * 8))
    steps = pl.cdiv(b8, tb_cap)
    if n_cores >= 2 and b8 >= 16 * n_cores:
        steps = _round_up(steps, n_cores)
    tb = _round_up(pl.cdiv(b8, steps), 8)
    return tb, steps * tb


def _spatial_emb_kernel(*refs, P, D, Dp, has_prop):
    # refs (has_prop): feat(TB,N*P), prop(TB,pe), w_prop(pe,Dp),
    #                  w_big(N*P,P*Dp), consts(R,Dp), out(TB,Dp)
    # refs (no prop) : feat, w_big, consts, out
    if has_prop:
        feat_ref, prop_ref, wprop_ref, wbig_ref, consts_ref, o_ref = refs
    else:
        feat_ref, wbig_ref, consts_ref, o_ref = refs
    tb = o_ref.shape[0]
    inv_d = 1.0 / D
    n_pad = float(Dp - D)

    # One MXU matmul yields all P per-patch projections: column block p holds
    # y[b, p, :] (before bias/prop).  Padded d-lanes are exactly zero.
    y_all = jnp.dot(feat_ref[...], wbig_ref[...],
                    preferred_element_type=jnp.float32)          # (TB, P*Dp)
    if has_prop:
        # Projected once per batch row, broadcast over the P patch rows below.
        prop_proj = jnp.dot(prop_ref[...], wprop_ref[...],
                            preferred_element_type=jnp.float32)  # (TB, Dp)

    bias = consts_ref[0:1, :].astype(jnp.float32)
    gamma = consts_ref[1:2, :].astype(jnp.float32)
    beta = consts_ref[2:3, :].astype(jnp.float32)

    acc = jnp.zeros((tb, Dp), jnp.float32)
    for p in range(P):          # static unroll; P == patch_dim (small)
        y = y_all[:, p * Dp:(p + 1) * Dp]           # 128-aligned lane slice
        if has_prop:
            y = y + prop_proj
        y = y + bias
        # LayerNorm over the TRUE proj_dim.  Padded lanes of y are exactly 0,
        # so the mean is exact; the centered sum of squares picks up
        # (Dp - D) * mean^2 from the padded lanes, subtracted in closed form.
        mean = jnp.sum(y, axis=-1, keepdims=True) * inv_d
        cent = y - mean
        var = (jnp.sum(cent * cent, axis=-1, keepdims=True)
               - n_pad * mean * mean) * inv_d
        var = jnp.maximum(var, 0.0)
        y = cent * lax.rsqrt(var + 1e-5) * gamma + beta
        y = jnp.maximum(y, 0.0)                      # ReLU
        # z[b] += spatial_weight[p] * y_p[b]  (P unrolled VPU multiply-adds;
        # padded gamma/beta/weight lanes are zero, so padding never leaks).
        acc = acc + consts_ref[3 + p:4 + p, :].astype(jnp.float32) * y

    # TODO(synk): nn.Dropout is identity in eval mode; training-mode dropout
    # (pltpu.prng_* masking) is not implemented here.
    o_ref[...] = acc.astype(o_ref.dtype)


def spatial_emb_forward(feat, prop, params, *, prop_dim, matmul_dtype=None):
    """feat: (B, num_patch, patch_dim), prop: (B, prop_dim) -> (B, proj_dim)."""
    w, b, gamma, beta, spatial_w = params
    B, N, P = feat.shape                    # N = num_patch, P = patch_dim
    D = w.shape[1]                          # proj_dim
    Dp = _round_up(D, 128)                  # lane-dense output / LN width
    NP, PDp = N * P, P * Dp
    has_prop = prop_dim > 0
    pe = prop_dim if has_prop else 0

    def pad_d(a):
        if a.shape[-1] == Dp:
            return a
        return jnp.pad(a, [(0, 0)] * (a.ndim - 1) + [(0, Dp - a.shape[-1])])

    # Fused "all-P" Linear weight: w_big[n*P + p, p*Dp + d] = W[n, d], so a
    # single matmul against feat.reshape(B, N*P) produces every y[b, p, :]
    # without any host transpose of feat.
    # TODO(synk): for large patch_dim this weight grows as P^2; switch to a
    # p-major (P, B, N) layout with per-p matmuls in that regime.
    w_patch = pad_d(w[:N])                                   # (N, Dp)
    eye_p = jnp.eye(P, dtype=w_patch.dtype)
    w_big = (w_patch[:, None, None, :] * eye_p[None, :, :, None]).reshape(NP, PDp)

    # Single constant slab: rows 0/1/2 = bias/gamma/beta, rows 3..3+P-1 =
    # spatial weight; zero-padded rows/lanes so padding never leaks.
    consts = jnp.concatenate(
        [pad_d(b.reshape(1, D)), pad_d(gamma.reshape(1, D)),
         pad_d(beta.reshape(1, D)), pad_d(spatial_w)], axis=0)
    R = _round_up(3 + P, 8)
    consts = jnp.pad(consts, ((0, R - (3 + P)), (0, 0)))

    if has_prop:
        w_prop = pad_d(w[N:N + prop_dim])                    # (pe, Dp)

    # Merging trailing (row-major contiguous) dims is a bitcast reshape: feat
    # is NOT rewritten in HBM before the kernel runs.
    feat2 = feat.reshape(B, NP)

    # --- batch tiling & VMEM budget -----------------------------------------
    n_cores = _num_tensorcores()
    vmem_cap = _vmem_capacity_bytes()
    per_b = 4 * (2 * NP + 2 * pe + 2 * Dp)        # pipelined in/out buffers
    per_b += 4 * (PDp + 3 * Dp)                   # f32 in-kernel intermediates
    fixed = 4 * (2 * NP * PDp + 2 * max(pe, 1) * Dp + 2 * R * Dp)
    budget = max(8 << 20, min(24 << 20, vmem_cap // 3))
    TB, B_pad = _choose_batch_tile(B, per_b, fixed, n_cores, budget)

    if B_pad > B:
        feat2 = jnp.pad(feat2, ((0, B_pad - B), (0, 0)))
    prop_in = None
    if has_prop:
        prop_in = prop if B_pad == B else jnp.pad(prop, ((0, B_pad - B), (0, 0)))

    # Optional reduced-precision matmul operands (recommended bf16 on v6e/v7x:
    # ~2x MXU throughput, half the feat DMA).  LN/ReLU/reduction stay f32.
    if matmul_dtype is not None:
        feat2 = feat2.astype(matmul_dtype)
        w_big = w_big.astype(matmul_dtype)
        if has_prop:
            prop_in = prop_in.astype(matmul_dtype)
            w_prop = w_prop.astype(matmul_dtype)

    kernel = functools.partial(_spatial_emb_kernel, P=P, D=D, Dp=Dp,
                               has_prop=has_prop)
    est_bytes = fixed + TB * per_b
    vmem_limit = int(min(vmem_cap * 3 // 4, max(32 << 20, 2 * est_bytes)))

    def _call(single_buffer_consts):
        def const_spec(shape):
            # Constant-index operands: single buffer (no double-buffering).
            if single_buffer_consts:
                return pl.BlockSpec(shape, lambda i: (0, 0),
                                    pipeline_mode=pl.Buffered(1))
            return pl.BlockSpec(shape, lambda i: (0, 0))

        in_specs = [pl.BlockSpec((TB, NP), lambda i: (i, 0))]
        operands = [feat2]
        if has_prop:
            in_specs += [pl.BlockSpec((TB, pe), lambda i: (i, 0)),
                         const_spec((pe, Dp))]
            operands += [prop_in, w_prop]
        in_specs += [const_spec((NP, PDp)), const_spec((R, Dp))]
        operands += [w_big, consts]

        return pl.pallas_call(
            kernel,
            out_shape=jax.ShapeDtypeStruct((B_pad, Dp), feat.dtype),
            grid_spec=pltpu.PrefetchScalarGridSpec(
                num_scalar_prefetch=0,
                grid=(B_pad // TB,),
                in_specs=in_specs,
                out_specs=pl.BlockSpec((TB, Dp), lambda i: (i, 0)),
            ),
            compiler_params=pltpu.CompilerParams(
                dimension_semantics=("parallel",),
                vmem_limit_bytes=vmem_limit),
        )(*operands)

    try:
        out = _call(True)      # single-buffer the constant operands
    except Exception:
        out = _call(False)     # this JAX build rejects Buffered(1): default specs
    return out[:B, :D]


def init_params(key, num_patch, patch_dim, prop_dim, proj_dim):
    proj_in_dim = num_patch + prop_dim
    num_proj = patch_dim
    k1, k2, k3 = jax.random.split(key, 3)
    # nn.Linear default init: U(-1/sqrt(fan_in), 1/sqrt(fan_in))
    bound = 1.0 / (proj_in_dim ** 0.5)
    w = jax.random.uniform(k1, (proj_in_dim, proj_dim), jnp.float32, -bound, bound)
    b = jax.random.uniform(k2, (proj_dim,), jnp.float32, -bound, bound)
    gamma = jnp.ones((proj_dim,), jnp.float32)
    beta = jnp.zeros((proj_dim,), jnp.float32)
    # self.weight: normal_ init, shape (1, num_proj, proj_dim) -> (num_proj, proj_dim)
    spatial_w = jax.random.normal(k3, (num_proj, proj_dim), jnp.float32)
    return (w, b, gamma, beta, spatial_w)


def reference_forward(feat, prop, params, *, prop_dim):
    """Pure-JAX reference mirroring the PyTorch forward (eval mode)."""
    w, b, gamma, beta, spatial_w = params
    x = jnp.transpose(feat, (0, 2, 1))
    if prop_dim > 0:
        rep = jnp.broadcast_to(prop[:, None, :], (x.shape[0], x.shape[1], prop_dim))
        x = jnp.concatenate([x, rep], axis=-1)
    y = x @ w + b
    mean = jnp.mean(y, axis=-1, keepdims=True)
    var = jnp.mean((y - mean) ** 2, axis=-1, keepdims=True)
    y = (y - mean) * lax.rsqrt(var + 1e-5) * gamma + beta
    y = jnp.maximum(y, 0.0)
    return jnp.sum(spatial_w[None] * y, axis=1)


if __name__ == "__main__":
    # Module hyperparameters (small, consistent with the forward pass).
    num_patch, patch_dim, prop_dim, proj_dim = 16, 4, 8, 32
    B = 8

    key = jax.random.PRNGKey(0)
    kf, kp, kw = jax.random.split(key, 3)
    feat = jax.random.normal(kf, (B, num_patch, patch_dim), jnp.float32)
    prop = jax.random.normal(kp, (B, prop_dim), jnp.float32)
    params = init_params(kw, num_patch, patch_dim, prop_dim, proj_dim)

    z = spatial_emb_forward(feat, prop, params, prop_dim=prop_dim)
    z = jax.block_until_ready(z)

    z_ref = reference_forward(feat, prop, params, prop_dim=prop_dim)
    assert z.shape == (B, proj_dim)
    assert jnp.allclose(z, z_ref, atol=2e-4, rtol=2e-4), "mismatch vs reference"

    print("KERNEL_OK")
</pallas_src>

<mosaic_0001>
module attributes {stable_mosaic.version = 11 : i64} {
  func.func @_spatial_emb_kernel(%arg0: i32, %arg1: memref<8x64xf32, #tpu.memory_space<vmem>>, %arg2: memref<8x8xf32, #tpu.memory_space<vmem>>, %arg3: memref<8x128xf32, #tpu.memory_space<vmem>>, %arg4: memref<64x512xf32, #tpu.memory_space<vmem>>, %arg5: memref<8x128xf32, #tpu.memory_space<vmem>>, %arg6: memref<8x128xf32, #tpu.memory_space<vmem>>) attributes {dimension_semantics = [#tpu.dimension_semantics<parallel>], iteration_bounds = array<i64: 1>, scalar_prefetch = 0 : i64, scratch_operands = 0 : i64, tpu.core_type = #tpu.core_type<tc>, window_params = [{transform_indices = @transform_0, window_bounds = array<i64: 8, 64>}, {transform_indices = @transform_1, window_bounds = array<i64: 8, 8>}, {pipeline_mode = #tpu.pipeline_mode<synchronous>, transform_indices = @transform_2, window_bounds = array<i64: 8, 128>}, {pipeline_mode = #tpu.pipeline_mode<synchronous>, transform_indices = @transform_3, window_bounds = array<i64: 64, 512>}, {pipeline_mode = #tpu.pipeline_mode<synchronous>, transform_indices = @transform_4, window_bounds = array<i64: 8, 128>}, {transform_indices = @transform_5, window_bounds = array<i64: 8, 128>}]} {
    %c0 = arith.constant 0 : index
    %c0_0 = arith.constant 0 : index
    %0 = vector.load %arg1[%c0, %c0_0] : memref<8x64xf32, #tpu.memory_space<vmem>>, vector<8x64xf32>
    %c0_1 = arith.constant 0 : index
    %c0_2 = arith.constant 0 : index
    %1 = vector.load %arg4[%c0_1, %c0_2] : memref<64x512xf32, #tpu.memory_space<vmem>>, vector<64x512xf32>
    %cst = arith.constant dense<0.000000e+00> : vector<8x512xf32>
    %2 = tpu.matmul %0, %1, %cst {dimension_numbers = #tpu.dot_dimension_numbers<[1], [0], [0], [1], [0, 0, 1, 1], [], []>} : vector<8x64xf32>, vector<64x512xf32>, vector<8x512xf32> -> vector<8x512xf32>
    %c0_3 = arith.constant 0 : index
    %c0_4 = arith.constant 0 : index
    %3 = vector.load %arg2[%c0_3, %c0_4] : memref<8x8xf32, #tpu.memory_space<vmem>>, vector<8x8xf32>
    %c0_5 = arith.constant 0 : index
    %c0_6 = arith.constant 0 : index
    %4 = vector.load %arg3[%c0_5, %c0_6] : memref<8x128xf32, #tpu.memory_space<vmem>>, vector<8x128xf32>
    %cst_7 = arith.constant dense<0.000000e+00> : vector<8x128xf32>
    %5 = tpu.matmul %3, %4, %cst_7 {dimension_numbers = #tpu.dot_dimension_numbers<[1], [0], [0], [1], [0, 0, 1, 1], [], []>} : vector<8x8xf32>, vector<8x128xf32>, vector<8x128xf32> -> vector<8x128xf32>
    %c0_8 = arith.constant 0 : index
    %c0_9 = arith.constant 0 : index
    %6 = vector.load %arg5[%c0_8, %c0_9] : memref<8x128xf32, #tpu.memory_space<vmem>>, vector<1x128xf32>
    %c1 = arith.constant 1 : index
    %c0_10 = arith.constant 0 : index
    %7 = vector.load %arg5[%c1, %c0_10] : memref<8x128xf32, #tpu.memory_space<vmem>>, vector<1x128xf32>
    %c2 = arith.constant 2 : index
    %c0_11 = arith.constant 0 : index
    %8 = vector.load %arg5[%c2, %c0_11] : memref<8x128xf32, #tpu.memory_space<vmem>>, vector<1x128xf32>
    %cst_12 = arith.constant 0.000000e+00 : f32
    %9 = vector.broadcast %cst_12 : f32 to vector<8x128xf32>
    %10 = vector.extract_strided_slice %2 {offsets = [0, 0], sizes = [8, 128], strides = [1, 1]} : vector<8x512xf32> to vector<8x128xf32>
    %11 = arith.addf %10, %5 : vector<8x128xf32>
    %12 = vector.broadcast %6 : vector<1x128xf32> to vector<8x128xf32>
    %13 = arith.addf %11, %12 : vector<8x128xf32>
    %cst_13 = arith.constant dense<0.000000e+00> : vector<8xf32>
    %14 = vector.multi_reduction <add>, %13, %cst_13 [1] : vector<8x128xf32> to vector<8xf32>
    %15 = vector.shape_cast %14 : vector<8xf32> to vector<8x1xf32>
    %cst_14 = arith.constant 3.125000e-02 : f32
    %16 = vector.broadcast %cst_14 : f32 to vector<8x1xf32>
    %17 = arith.mulf %15, %16 : vector<8x1xf32>
    %18 = vector.broadcast %17 : vector<8x1xf32> to vector<8x128xf32>
    %19 = arith.subf %13, %18 : vector<8x128xf32>
    %20 = arith.mulf %19, %19 : vector<8x128xf32>
    %cst_15 = arith.constant dense<0.000000e+00> : vector<8xf32>
    %21 = vector.multi_reduction <add>, %20, %cst_15 [1] : vector<8x128xf32> to vector<8xf32>
    %22 = vector.shape_cast %21 : vector<8xf32> to vector<8x1xf32>
    %cst_16 = arith.constant 9.600000e+01 : f32
    %23 = vector.broadcast %cst_16 : f32 to vector<8x1xf32>
    %24 = arith.mulf %23, %17 : vector<8x1xf32>
    %25 = arith.mulf %24, %17 : vector<8x1xf32>
    %26 = arith.subf %22, %25 : vector<8x1xf32>
    %cst_17 = arith.constant 3.125000e-02 : f32
    %27 = vector.broadcast %cst_17 : f32 to vector<8x1xf32>
    %28 = arith.mulf %26, %27 : vector<8x1xf32>
    %cst_18 = arith.constant 0.000000e+00 : f32
    %29 = vector.broadcast %cst_18 : f32 to vector<8x1xf32>
    %30 = arith.maximumf %28, %29 : vector<8x1xf32>
    %cst_19 = arith.constant 9.99999974E-6 : f32
    %31 = vector.broadcast %cst_19 : f32 to vector<8x1xf32>
    %32 = arith.addf %30, %31 : vector<8x1xf32>
    %33 = math.rsqrt %32 : vector<8x1xf32>
    %34 = vector.broadcast %33 : vector<8x1xf32> to vector<8x128xf32>
    %35 = arith.mulf %19, %34 : vector<8x128xf32>
    %36 = vector.broadcast %7 : vector<1x128xf32> to vector<8x128xf32>
    %37 = arith.mulf %35, %36 : vector<8x128xf32>
    %38 = vector.broadcast %8 : vector<1x128xf32> to vector<8x128xf32>
    %39 = arith.addf %37, %38 : vector<8x128xf32>
    %cst_20 = arith.constant 0.000000e+00 : f32
    %40 = vector.broadcast %cst_20 : f32 to vector<8x128xf32>
    %41 = arith.maximumf %39, %40 : vector<8x128xf32>
    %c3 = arith.constant 3 : index
    %c0_21 = arith.constant 0 : index
    %42 = vector.load %arg5[%c3, %c0_21] : memref<8x128xf32, #tpu.memory_space<vmem>>, vector<1x128xf32>
    %43 = vector.broadcast %42 : vector<1x128xf32> to vector<8x128xf32>
    %44 = arith.mulf %43, %41 : vector<8x128xf32>
    %45 = arith.addf %9, %44 : vector<8x128xf32>
    %46 = vector.extract_strided_slice %2 {offsets = [0, 128], sizes = [8, 128], strides = [1, 1]} : vector<8x512xf32> to vector<8x128xf32>
    %47 = arith.addf %46, %5 : vector<8x128xf32>
    %48 = vector.broadcast %6 : vector<1x128xf32> to vector<8x128xf32>
    %49 = arith.addf %47, %48 : vector<8x128xf32>
    %cst_22 = arith.constant dense<0.000000e+00> : vector<8xf32>
    %50 = vector.multi_reduction <add>, %49, %cst_22 [1] : vector<8x128xf32> to vector<8xf32>
    %51 = vector.shape_cast %50 : vector<8xf32> to vector<8x1xf32>
    %cst_23 = arith.constant 3.125000e-02 : f32
    %52 = vector.broadcast %cst_23 : f32 to vector<8x1xf32>
    %53 = arith.mulf %51, %52 : vector<8x1xf32>
    %54 = vector.broadcast %53 : vector<8x1xf32> to vector<8x128xf32>
    %55 = arith.subf %49, %54 : vector<8x128xf32>
    %56 = arith.mulf %55, %55 : vector<8x128xf32>
    %cst_24 = arith.constant dense<0.000000e+00> : vector<8xf32>
    %57 = vector.multi_reduction <add>, %56, %cst_24 [1] : vector<8x128xf32> to vector<8xf32>
    %58 = vector.shape_cast %57 : vector<8xf32> to vector<8x1xf32>
    %cst_25 = arith.constant 9.600000e+01 : f32
    %59 = vector.broadcast %cst_25 : f32 to vector<8x1xf32>
    %60 = arith.mulf %59, %53 : vector<8x1xf32>
    %61 = arith.mulf %60, %53 : vector<8x1xf32>
    %62 = arith.subf %58, %61 : vector<8x1xf32>
    %cst_26 = arith.constant 3.125000e-02 : f32
    %63 = vector.broadcast %cst_26 : f32 to vector<8x1xf32>
    %64 = arith.mulf %62, %63 : vector<8x1xf32>
    %cst_27 = arith.constant 0.000000e+00 : f32
    %65 = vector.broadcast %cst_27 : f32 to vector<8x1xf32>
    %66 = arith.maximumf %64, %65 : vector<8x1xf32>
    %cst_28 = arith.constant 9.99999974E-6 : f32
    %67 = vector.broadcast %cst_28 : f32 to vector<8x1xf32>
    %68 = arith.addf %66, %67 : vector<8x1xf32>
    %69 = math.rsqrt %68 : vector<8x1xf32>
    %70 = vector.broadcast %69 : vector<8x1xf32> to vector<8x128xf32>
    %71 = arith.mulf %55, %70 : vector<8x128xf32>
    %72 = vector.broadcast %7 : vector<1x128xf32> to vector<8x128xf32>
    %73 = arith.mulf %71, %72 : vector<8x128xf32>
    %74 = vector.broadcast %8 : vector<1x128xf32> to vector<8x128xf32>
    %75 = arith.addf %73, %74 : vector<8x128xf32>
    %cst_29 = arith.constant 0.000000e+00 : f32
    %76 = vector.broadcast %cst_29 : f32 to vector<8x128xf32>
    %77 = arith.maximumf %75, %76 : vector<8x128xf32>
    %c4 = arith.constant 4 : index
    %c0_30 = arith.constant 0 : index
    %78 = vector.load %arg5[%c4, %c0_30] : memref<8x128xf32, #tpu.memory_space<vmem>>, vector<1x128xf32>
    %79 = vector.broadcast %78 : vector<1x128xf32> to vector<8x128xf32>
    %80 = arith.mulf %79, %77 : vector<8x128xf32>
    %81 = arith.addf %45, %80 : vector<8x128xf32>
    %82 = vector.extract_strided_slice %2 {offsets = [0, 256], sizes = [8, 128], strides = [1, 1]} : vector<8x512xf32> to vector<8x128xf32>
    %83 = arith.addf %82, %5 : vector<8x128xf32>
    %84 = vector.broadcast %6 : vector<1x128xf32> to vector<8x128xf32>
    %85 = arith.addf %83, %84 : vector<8x128xf32>
    %cst_31 = arith.constant dense<0.000000e+00> : vector<8xf32>
    %86 = vector.multi_reduction <add>, %85, %cst_31 [1] : vector<8x128xf32> to vector<8xf32>
    %87 = vector.shape_cast %86 : vector<8xf32> to vector<8x1xf32>
    %cst_32 = arith.constant 3.125000e-02 : f32
    %88 = vector.broadcast %cst_32 : f32 to vector<8x1xf32>
    %89 = arith.mulf %87, %88 : vector<8x1xf32>
    %90 = vector.broadcast %89 : vector<8x1xf32> to vector<8x128xf32>
    %91 = arith.subf %85, %90 : vector<8x128xf32>
    %92 = arith.mulf %91, %91 : vector<8x128xf32>
    %cst_33 = arith.constant dense<0.000000e+00> : vector<8xf32>
    %93 = vector.multi_reduction <add>, %92, %cst_33 [1] : vector<8x128xf32> to vector<8xf32>
    %94 = vector.shape_cast %93 : vector<8xf32> to vector<8x1xf32>
    %cst_34 = arith.constant 9.600000e+01 : f32
    %95 = vector.broadcast %cst_34 : f32 to vector<8x1xf32>
    %96 = arith.mulf %95, %89 : vector<8x1xf32>
    %97 = arith.mulf %96, %89 : vector<8x1xf32>
    %98 = arith.subf %94, %97 : vector<8x1xf32>
    %cst_35 = arith.constant 3.125000e-02 : f32
    %99 = vector.broadcast %cst_35 : f32 to vector<8x1xf32>
    %100 = arith.mulf %98, %99 : vector<8x1xf32>
    %cst_36 = arith.constant 0.000000e+00 : f32
    %101 = vector.broadcast %cst_36 : f32 to vector<8x1xf32>
    %102 = arith.maximumf %100, %101 : vector<8x1xf32>
    %cst_37 = arith.constant 9.99999974E-6 : f32
    %103 = vector.broadcast %cst_37 : f32 to vector<8x1xf32>
    %104 = arith.addf %102, %103 : vector<8x1xf32>
    %105 = math.rsqrt %104 : vector<8x1xf32>
    %106 = vector.broadcast %105 : vector<8x1xf32> to vector<8x128xf32>
    %107 = arith.mulf %91, %106 : vector<8x128xf32>
    %108 = vector.broadcast %7 : vector<1x128xf32> to vector<8x128xf32>
    %109 = arith.mulf %107, %108 : vector<8x128xf32>
    %110 = vector.broadcast %8 : vector<1x128xf32> to vector<8x128xf32>
    %111 = arith.addf %109, %110 : vector<8x128xf32>
    %cst_38 = arith.constant 0.000000e+00 : f32
    %112 = vector.broadcast %cst_38 : f32 to vector<8x128xf32>
    %113 = arith.maximumf %111, %112 : vector<8x128xf32>
    %c5 = arith.constant 5 : index
    %c0_39 = arith.constant 0 : index
    %114 = vector.load %arg5[%c5, %c0_39] : memref<8x128xf32, #tpu.memory_space<vmem>>, vector<1x128xf32>
    %115 = vector.broadcast %114 : vector<1x128xf32> to vector<8x128xf32>
    %116 = arith.mulf %115, %113 : vector<8x128xf32>
    %117 = arith.addf %81, %116 : vector<8x128xf32>
    %118 = vector.extract_strided_slice %2 {offsets = [0, 384], sizes = [8, 128], strides = [1, 1]} : vector<8x512xf32> to vector<8x128xf32>
    %119 = arith.addf %118, %5 : vector<8x128xf32>
    %120 = vector.broadcast %6 : vector<1x128xf32> to vector<8x128xf32>
    %121 = arith.addf %119, %120 : vector<8x128xf32>
    %cst_40 = arith.constant dense<0.000000e+00> : vector<8xf32>
    %122 = vector.multi_reduction <add>, %121, %cst_40 [1] : vector<8x128xf32> to vector<8xf32>
    %123 = vector.shape_cast %122 : vector<8xf32> to vector<8x1xf32>
    %cst_41 = arith.constant 3.125000e-02 : f32
    %124 = vector.broadcast %cst_41 : f32 to vector<8x1xf32>
    %125 = arith.mulf %123, %124 : vector<8x1xf32>
    %126 = vector.broadcast %125 : vector<8x1xf32> to vector<8x128xf32>
    %127 = arith.subf %121, %126 : vector<8x128xf32>
    %128 = arith.mulf %127, %127 : vector<8x128xf32>
    %cst_42 = arith.constant dense<0.000000e+00> : vector<8xf32>
    %129 = vector.multi_reduction <add>, %128, %cst_42 [1] : vector<8x128xf32> to vector<8xf32>
    %130 = vector.shape_cast %129 : vector<8xf32> to vector<8x1xf32>
    %cst_43 = arith.constant 9.600000e+01 : f32
    %131 = vector.broadcast %cst_43 : f32 to vector<8x1xf32>
    %132 = arith.mulf %131, %125 : vector<8x1xf32>
    %133 = arith.mulf %132, %125 : vector<8x1xf32>
    %134 = arith.subf %130, %133 : vector<8x1xf32>
    %cst_44 = arith.constant 3.125000e-02 : f32
    %135 = vector.broadcast %cst_44 : f32 to vector<8x1xf32>
    %136 = arith.mulf %134, %135 : vector<8x1xf32>
    %cst_45 = arith.constant 0.000000e+00 : f32
    %137 = vector.broadcast %cst_45 : f32 to vector<8x1xf32>
    %138 = arith.maximumf %136, %137 : vector<8x1xf32>
    %cst_46 = arith.constant 9.99999974E-6 : f32
    %139 = vector.broadcast %cst_46 : f32 to vector<8x1xf32>
    %140 = arith.addf %138, %139 : vector<8x1xf32>
    %141 = math.rsqrt %140 : vector<8x1xf32>
    %142 = vector.broadcast %141 : vector<8x1xf32> to vector<8x128xf32>
    %143 = arith.mulf %127, %142 : vector<8x128xf32>
    %144 = vector.broadcast %7 : vector<1x128xf32> to vector<8x128xf32>
    %145 = arith.mulf %143, %144 : vector<8x128xf32>
    %146 = vector.broadcast %8 : vector<1x128xf32> to vector<8x128xf32>
    %147 = arith.addf %145, %146 : vector<8x128xf32>
    %cst_47 = arith.constant 0.000000e+00 : f32
    %148 = vector.broadcast %cst_47 : f32 to vector<8x128xf32>
    %149 = arith.maximumf %147, %148 : vector<8x128xf32>
    %c6 = arith.constant 6 : index
    %c0_48 = arith.constant 0 : index
    %150 = vector.load %arg5[%c6, %c0_48] : memref<8x128xf32, #tpu.memory_space<vmem>>, vector<1x128xf32>
    %151 = vector.broadcast %150 : vector<1x128xf32> to vector<8x128xf32>
    %152 = arith.mulf %151, %149 : vector<8x128xf32>
    %153 = arith.addf %117, %152 : vector<8x128xf32>
    %c0_49 = arith.constant 0 : index
    %c0_50 = arith.constant 0 : index
    %154 = vector.load %arg6[%c0_49, %c0_50] : memref<8x128xf32, #tpu.memory_space<vmem>>, vector<8x128xf32>
    tpu.vector_store %arg6[%c0_49, %c0_50], %153 {strides = array<i32>} : memref<8x128xf32, #tpu.memory_space<vmem>>, vector<8x128xf32>,
    return
  }
  func.func @transform_0(%arg0: i32) -> (i32, i32) {
    %c0_i32 = arith.constant 0 : i32
    %c0_i32_0 = arith.constant 0 : i32
    return %arg0, %c0_i32 : i32, i32
  }
  func.func @transform_1(%arg0: i32) -> (i32, i32) {
    %c0_i32 = arith.constant 0 : i32
    %c0_i32_0 = arith.constant 0 : i32
    return %arg0, %c0_i32 : i32, i32
  }
  func.func @transform_2(%arg0: i32) -> (i32, i32) {
    %c0_i32 = arith.constant 0 : i32
    %c0_i32_0 = arith.constant 0 : i32
    %c0_i32_1 = arith.constant 0 : i32
    return %c0_i32, %c0_i32_0 : i32, i32
  }
  func.func @transform_3(%arg0: i32) -> (i32, i32) {
    %c0_i32 = arith.constant 0 : i32
    %c0_i32_0 = arith.constant 0 : i32
    %c0_i32_1 = arith.constant 0 : i32
    return %c0_i32, %c0_i32_0 : i32, i32
  }
  func.func @transform_4(%arg0: i32) -> (i32, i32) {
    %c0_i32 = arith.constant 0 : i32
    %c0_i32_0 = arith.constant 0 : i32
    %c0_i32_1 = arith.constant 0 : i32
    return %c0_i32, %c0_i32_0 : i32, i32
  }
  func.func @transform_5(%arg0: i32) -> (i32, i32) {
    %c0_i32 = arith.constant 0 : i32
    %c0_i32_0 = arith.constant 0 : i32
    return %arg0, %c0_i32 : i32, i32
  }
}

module attributes {stable_mosaic.version = 11 : i64} {
  func.func @_spatial_emb_kernel(%arg0: i32, %arg1: memref<8x64xf32, #tpu.memory_space<vmem>>, %arg2: memref<8x8xf32, #tpu.memory_space<vmem>>, %arg3: memref<8x128xf32, #tpu.memory_space<vmem>>, %arg4: memref<64x512xf32, #tpu.memory_space<vmem>>, %arg5: memref<8x128xf32, #tpu.memory_space<vmem>>, %arg6: memref<8x128xf32, #tpu.memory_space<vmem>>) attributes {dimension_semantics = [#tpu.dimension_semantics<parallel>], iteration_bounds = array<i64: 1>, scalar_prefetch = 0 : i64, scratch_operands = 0 : i64, tpu.core_type = #tpu.core_type<tc>, window_params = [{transform_indices = @transform_0, window_bounds = array<i64: 8, 64>}, {transform_indices = @transform_1, window_bounds = array<i64: 8, 8>}, {pipeline_mode = #tpu.pipeline_mode<synchronous>, transform_indices = @transform_2, window_bounds = array<i64: 8, 128>}, {pipeline_mode = #tpu.pipeline_mode<synchronous>, transform_indices = @transform_3, window_bounds = array<i64: 64, 512>}, {pipeline_mode = #tpu.pipeline_mode<synchronous>, transform_indices = @transform_4, window_bounds = array<i64: 8, 128>}, {transform_indices = @transform_5, window_bounds = array<i64: 8, 128>}]} {
    %c0 = arith.constant 0 : index
    %c0_0 = arith.constant 0 : index
    %0 = vector.load %arg1[%c0, %c0_0] : memref<8x64xf32, #tpu.memory_space<vmem>>, vector<8x64xf32>
    %c0_1 = arith.constant 0 : index
    %c0_2 = arith.constant 0 : index
    %1 = vector.load %arg4[%c0_1, %c0_2] : memref<64x512xf32, #tpu.memory_space<vmem>>, vector<64x512xf32>
    %cst = arith.constant dense<0.000000e+00> : vector<8x512xf32>
    %2 = tpu.matmul %0, %1, %cst {dimension_numbers = #tpu.dot_dimension_numbers<[1], [0], [0], [1], [0, 0, 1, 1], [], []>} : vector<8x64xf32>, vector<64x512xf32>, vector<8x512xf32> -> vector<8x512xf32>
    %c0_3 = arith.constant 0 : index
    %c0_4 = arith.constant 0 : index
    %3 = vector.load %arg2[%c0_3, %c0_4] : memref<8x8xf32, #tpu.memory_space<vmem>>, vector<8x8xf32>
    %c0_5 = arith.constant 0 : index
    %c0_6 = arith.constant 0 : index
    %4 = vector.load %arg3[%c0_5, %c0_6] : memref<8x128xf32, #tpu.memory_space<vmem>>, vector<8x128xf32>
    %cst_7 = arith.constant dense<0.000000e+00> : vector<8x128xf32>
    %5 = tpu.matmul %3, %4, %cst_7 {dimension_numbers = #tpu.dot_dimension_numbers<[1], [0], [0], [1], [0, 0, 1, 1], [], []>} : vector<8x8xf32>, vector<8x128xf32>, vector<8x128xf32> -> vector<8x128xf32>
    %c0_8 = arith.constant 0 : index
    %c0_9 = arith.constant 0 : index
    %6 = vector.load %arg5[%c0_8, %c0_9] : memref<8x128xf32, #tpu.memory_space<vmem>>, vector<1x128xf32>
    %c1 = arith.constant 1 : index
    %c0_10 = arith.constant 0 : index
    %7 = vector.load %arg5[%c1, %c0_10] : memref<8x128xf32, #tpu.memory_space<vmem>>, vector<1x128xf32>
    %c2 = arith.constant 2 : index
    %c0_11 = arith.constant 0 : index
    %8 = vector.load %arg5[%c2, %c0_11] : memref<8x128xf32, #tpu.memory_space<vmem>>, vector<1x128xf32>
    %cst_12 = arith.constant 0.000000e+00 : f32
    %9 = vector.broadcast %cst_12 : f32 to vector<8x128xf32>
    %10 = vector.extract_strided_slice %2 {offsets = [0, 0], sizes = [8, 128], strides = [1, 1]} : vector<8x512xf32> to vector<8x128xf32>
    %11 = arith.addf %10, %5 : vector<8x128xf32>
    %12 = vector.broadcast %6 : vector<1x128xf32> to vector<8x128xf32>
    %13 = arith.addf %11, %12 : vector<8x128xf32>
    %cst_13 = arith.constant dense<0.000000e+00> : vector<8xf32>
    %14 = vector.multi_reduction <add>, %13, %cst_13 [1] : vector<8x128xf32> to vector<8xf32>
    %15 = vector.shape_cast %14 : vector<8xf32> to vector<8x1xf32>
    %cst_14 = arith.constant 3.125000e-02 : f32
    %16 = vector.broadcast %cst_14 : f32 to vector<8x1xf32>
    %17 = arith.mulf %15, %16 : vector<8x1xf32>
    %18 = vector.broadcast %17 : vector<8x1xf32> to vector<8x128xf32>
    %19 = arith.subf %13, %18 : vector<8x128xf32>
    %20 = arith.mulf %19, %19 : vector<8x128xf32>
    %cst_15 = arith.constant dense<0.000000e+00> : vector<8xf32>
    %21 = vector.multi_reduction <add>, %20, %cst_15 [1] : vector<8x128xf32> to vector<8xf32>
    %22 = vector.shape_cast %21 : vector<8xf32> to vector<8x1xf32>
    %cst_16 = arith.constant 9.600000e+01 : f32
    %23 = vector.broadcast %cst_16 : f32 to vector<8x1xf32>
    %24 = arith.mulf %23, %17 : vector<8x1xf32>
    %25 = arith.mulf %24, %17 : vector<8x1xf32>
    %26 = arith.subf %22, %25 : vector<8x1xf32>
    %cst_17 = arith.constant 3.125000e-02 : f32
    %27 = vector.broadcast %cst_17 : f32 to vector<8x1xf32>
    %28 = arith.mulf %26, %27 : vector<8x1xf32>
    %cst_18 = arith.constant 0.000000e+00 : f32
    %29 = vector.broadcast %cst_18 : f32 to vector<8x1xf32>
    %30 = arith.maximumf %28, %29 : vector<8x1xf32>
    %cst_19 = arith.constant 9.99999974E-6 : f32
    %31 = vector.broadcast %cst_19 : f32 to vector<8x1xf32>
    %32 = arith.addf %30, %31 : vector<8x1xf32>
    %33 = math.rsqrt %32 : vector<8x1xf32>
    %34 = vector.broadcast %33 : vector<8x1xf32> to vector<8x128xf32>
    %35 = arith.mulf %19, %34 : vector<8x128xf32>
    %36 = vector.broadcast %7 : vector<1x128xf32> to vector<8x128xf32>
    %37 = arith.mulf %35, %36 : vector<8x128xf32>
    %38 = vector.broadcast %8 : vector<1x128xf32> to vector<8x128xf32>
    %39 = arith.addf %37, %38 : vector<8x128xf32>
    %cst_20 = arith.constant 0.000000e+00 : f32
    %40 = vector.broadcast %cst_20 : f32 to vector<8x128xf32>
    %41 = arith.maximumf %39, %40 : vector<8x128xf32>
    %c3 = arith.constant 3 : index
    %c0_21 = arith.constant 0 : index
    %42 = vector.load %arg5[%c3, %c0_21] : memref<8x128xf32, #tpu.memory_space<vmem>>, vector<1x128xf32>
    %43 = vector.broadcast %42 : vector<1x128xf32> to vector<8x128xf32>
    %44 = arith.mulf %43, %41 : vector<8x128xf32>
    %45 = arith.addf %9, %44 : vector<8x128xf32>
    %46 = vector.extract_strided_slice %2 {offsets = [0, 128], sizes = [8, 128], strides = [1, 1]} : vector<8x512xf32> to vector<8x128xf32>
    %47 = arith.addf %46, %5 : vector<8x128xf32>
    %48 = vector.broadcast %6 : vector<1x128xf32> to vector<8x128xf32>
    %49 = arith.addf %47, %48 : vector<8x128xf32>
    %cst_22 = arith.constant dense<0.000000e+00> : vector<8xf32>
    %50 = vector.multi_reduction <add>, %49, %cst_22 [1] : vector<8x128xf32> to vector<8xf32>
    %51 = vector.shape_cast %50 : vector<8xf32> to vector<8x1xf32>
    %cst_23 = arith.constant 3.125000e-02 : f32
    %52 = vector.broadcast %cst_23 : f32 to vector<8x1xf32>
    %53 = arith.mulf %51, %52 : vector<8x1xf32>
    %54 = vector.broadcast %53 : vector<8x1xf32> to vector<8x128xf32>
    %55 = arith.subf %49, %54 : vector<8x128xf32>
    %56 = arith.mulf %55, %55 : vector<8x128xf32>
    %cst_24 = arith.constant dense<0.000000e+00> : vector<8xf32>
    %57 = vector.multi_reduction <add>, %56, %cst_24 [1] : vector<8x128xf32> to vector<8xf32>
    %58 = vector.shape_cast %57 : vector<8xf32> to vector<8x1xf32>
    %cst_25 = arith.constant 9.600000e+01 : f32
    %59 = vector.broadcast %cst_25 : f32 to vector<8x1xf32>
    %60 = arith.mulf %59, %53 : vector<8x1xf32>
    %61 = arith.mulf %60, %53 : vector<8x1xf32>
    %62 = arith.subf %58, %61 : vector<8x1xf32>
    %cst_26 = arith.constant 3.125000e-02 : f32
    %63 = vector.broadcast %cst_26 : f32 to vector<8x1xf32>
    %64 = arith.mulf %62, %63 : vector<8x1xf32>
    %cst_27 = arith.constant 0.000000e+00 : f32
    %65 = vector.broadcast %cst_27 : f32 to vector<8x1xf32>
    %66 = arith.maximumf %64, %65 : vector<8x1xf32>
    %cst_28 = arith.constant 9.99999974E-6 : f32
    %67 = vector.broadcast %cst_28 : f32 to vector<8x1xf32>
    %68 = arith.addf %66, %67 : vector<8x1xf32>
    %69 = math.rsqrt %68 : vector<8x1xf32>
    %70 = vector.broadcast %69 : vector<8x1xf32> to vector<8x128xf32>
    %71 = arith.mulf %55, %70 : vector<8x128xf32>
    %72 = vector.broadcast %7 : vector<1x128xf32> to vector<8x128xf32>
    %73 = arith.mulf %71, %72 : vector<8x128xf32>
    %74 = vector.broadcast %8 : vector<1x128xf32> to vector<8x128xf32>
    %75 = arith.addf %73, %74 : vector<8x128xf32>
    %cst_29 = arith.constant 0.000000e+00 : f32
    %76 = vector.broadcast %cst_29 : f32 to vector<8x128xf32>
    %77 = arith.maximumf %75, %76 : vector<8x128xf32>
    %c4 = arith.constant 4 : index
    %c0_30 = arith.constant 0 : index
    %78 = vector.load %arg5[%c4, %c0_30] : memref<8x128xf32, #tpu.memory_space<vmem>>, vector<1x128xf32>
    %79 = vector.broadcast %78 : vector<1x128xf32> to vector<8x128xf32>
    %80 = arith.mulf %79, %77 : vector<8x128xf32>
    %81 = arith.addf %45, %80 : vector<8x128xf32>
    %82 = vector.extract_strided_slice %2 {offsets = [0, 256], sizes = [8, 128], strides = [1, 1]} : vector<8x512xf32> to vector<8x128xf32>
    %83 = arith.addf %82, %5 : vector<8x128xf32>
    %84 = vector.broadcast %6 : vector<1x128xf32> to vector<8x128xf32>
    %85 = arith.addf %83, %84 : vector<8x128xf32>
    %cst_31 = arith.constant dense<0.000000e+00> : vector<8xf32>
    %86 = vector.multi_reduction <add>, %85, %cst_31 [1] : vector<8x128xf32> to vector<8xf32>
    %87 = vector.shape_cast %86 : vector<8xf32> to vector<8x1xf32>
    %cst_32 = arith.constant 3.125000e-02 : f32
    %88 = vector.broadcast %cst_32 : f32 to vector<8x1xf32>
    %89 = arith.mulf %87, %88 : vector<8x1xf32>
    %90 = vector.broadcast %89 : vector<8x1xf32> to vector<8x128xf32>
    %91 = arith.subf %85, %90 : vector<8x128xf32>
    %92 = arith.mulf %91, %91 : vector<8x128xf32>
    %cst_33 = arith.constant dense<0.000000e+00> : vector<8xf32>
    %93 = vector.multi_reduction <add>, %92, %cst_33 [1] : vector<8x128xf32> to vector<8xf32>
    %94 = vector.shape_cast %93 : vector<8xf32> to vector<8x1xf32>
    %cst_34 = arith.constant 9.600000e+01 : f32
    %95 = vector.broadcast %cst_34 : f32 to vector<8x1xf32>
    %96 = arith.mulf %95, %89 : vector<8x1xf32>
    %97 = arith.mulf %96, %89 : vector<8x1xf32>
    %98 = arith.subf %94, %97 : vector<8x1xf32>
    %cst_35 = arith.constant 3.125000e-02 : f32
    %99 = vector.broadcast %cst_35 : f32 to vector<8x1xf32>
    %100 = arith.mulf %98, %99 : vector<8x1xf32>
    %cst_36 = arith.constant 0.000000e+00 : f32
    %101 = vector.broadcast %cst_36 : f32 to vector<8x1xf32>
    %102 = arith.maximumf %100, %101 : vector<8x1xf32>
    %cst_37 = arith.constant 9.99999974E-6 : f32
    %103 = vector.broadcast %cst_37 : f32 to vector<8x1xf32>
    %104 = arith.addf %102, %103 : vector<8x1xf32>
    %105 = math.rsqrt %104 : vector<8x1xf32>
    %106 = vector.broadcast %105 : vector<8x1xf32> to vector<8x128xf32>
    %107 = arith.mulf %91, %106 : vector<8x128xf32>
    %108 = vector.broadcast %7 : vector<1x128xf32> to vector<8x128xf32>
    %109 = arith.mulf %107, %108 : vector<8x128xf32>
    %110 = vector.broadcast %8 : vector<1x128xf32> to vector<8x128xf32>
    %111 = arith.addf %109, %110 : vector<8x128xf32>
    %cst_38 = arith.constant 0.000000e+00 : f32
    %112 = vector.broadcast %cst_38 : f32 to vector<8x128xf32>
    %113 = arith.maximumf %111, %112 : vector<8x128xf32>
    %c5 = arith.constant 5 : index
    %c0_39 = arith.constant 0 : index
    %114 = vector.load %arg5[%c5, %c0_39] : memref<8x128xf32, #tpu.memory_space<vmem>>, vector<1x128xf32>
    %115 = vector.broadcast %114 : vector<1x128xf32> to vector<8x128xf32>
    %116 = arith.mulf %115, %113 : vector<8x128xf32>
    %117 = arith.addf %81, %116 : vector<8x128xf32>
    %118 = vector.extract_strided_slice %2 {offsets = [0, 384], sizes = [8, 128], strides = [1, 1]} : vector<8x512xf32> to vector<8x128xf32>
    %119 = arith.addf %118, %5 : vector<8x128xf32>
    %120 = vector.broadcast %6 : vector<1x128xf32> to vector<8x128xf32>
    %121 = arith.addf %119, %120 : vector<8x128xf32>
    %cst_40 = arith.constant dense<0.000000e+00> : vector<8xf32>
    %122 = vector.multi_reduction <add>, %121, %cst_40 [1] : vector<8x128xf32> to vector<8xf32>
    %123 = vector.shape_cast %122 : vector<8xf32> to vector<8x1xf32>
    %cst_41 = arith.constant 3.125000e-02 : f32
    %124 = vector.broadcast %cst_41 : f32 to vector<8x1xf32>
    %125 = arith.mulf %123, %124 : vector<8x1xf32>
    %126 = vector.broadcast %125 : vector<8x1xf32> to vector<8x128xf32>
    %127 = arith.subf %121, %126 : vector<8x128xf32>
    %128 = arith.mulf %127, %127 : vector<8x128xf32>
    %cst_42 = arith.constant dense<0.000000e+00> : vector<8xf32>
    %129 = vector.multi_reduction <add>, %128, %cst_42 [1] : vector<8x128xf32> to vector<8xf32>
    %130 = vector.shape_cast %129 : vector<8xf32> to vector<8x1xf32>
    %cst_43 = arith.constant 9.600000e+01 : f32
    %131 = vector.broadcast %cst_43 : f32 to vector<8x1xf32>
    %132 = arith.mulf %131, %125 : vector<8x1xf32>
    %133 = arith.mulf %132, %125 : vector<8x1xf32>
    %134 = arith.subf %130, %133 : vector<8x1xf32>
    %cst_44 = arith.constant 3.125000e-02 : f32
    %135 = vector.broadcast %cst_44 : f32 to vector<8x1xf32>
    %136 = arith.mulf %134, %135 : vector<8x1xf32>
    %cst_45 = arith.constant 0.000000e+00 : f32
    %137 = vector.broadcast %cst_45 : f32 to vector<8x1xf32>
    %138 = arith.maximumf %136, %137 : vector<8x1xf32>
    %cst_46 = arith.constant 9.99999974E-6 : f32
    %139 = vector.broadcast %cst_46 : f32 to vector<8x1xf32>
    %140 = arith.addf %138, %139 : vector<8x1xf32>
    %141 = math.rsqrt %140 : vector<8x1xf32>
    %142 = vector.broadcast %141 : vector<8x1xf32> to vector<8x128xf32>
    %143 = arith.mulf %127, %142 : vector<8x128xf32>
    %144 = vector.broadcast %7 : vector<1x128xf32> to vector<8x128xf32>
    %145 = arith.mulf %143, %144 : vector<8x128xf32>
    %146 = vector.broadcast %8 : vector<1x128xf32> to vector<8x128xf32>
    %147 = arith.addf %145, %146 : vector<8x128xf32>
    %cst_47 = arith.constant 0.000000e+00 : f32
    %148 = vector.broadcast %cst_47 : f32 to vector<8x128xf32>
    %149 = arith.maximumf %147, %148 : vector<8x128xf32>
    %c6 = arith.constant 6 : index
    %c0_48 = arith.constant 0 : index
    %150 = vector.load %arg5[%c6, %c0_48] : memref<8x128xf32, #tpu.memory_space<vmem>>, vector<1x128xf32>
    %151 = vector.broadcast %150 : vector<1x128xf32> to vector<8x128xf32>
    %152 = arith.mulf %151, %149 : vector<8x128xf32>
    %153 = arith.addf %117, %152 : vector<8x128xf32>
    %c0_49 = arith.constant 0 : index
    %c0_50 = arith.constant 0 : index
    %154 = vector.load %arg6[%c0_49, %c0_50] : memref<8x128xf32, #tpu.memory_space<vmem>>, vector<8x128xf32>
    tpu.vector_store %arg6[%c0_49, %c0_50], %153 {strides = array<i32>} : memref<8x128xf32, #tpu.memory_space<vmem>>, vector<8x128xf32>,
    return
  }
  func.func @transform_0(%arg0: i32) -> (i32, i32) {
    %c0_i32 = arith.constant 0 : i32
    %c0_i32_0 = arith.constant 0 : i32
    return %arg0, %c0_i32 : i32, i32
  }
  func.func @transform_1(%arg0: i32) -> (i32, i32) {
    %c0_i32 = arith.constant 0 : i32
    %c0_i32_0 = arith.constant 0 : i32
    return %arg0, %c0_i32 : i32, i32
  }
  func.func @transform_2(%arg0: i32) -> (i32, i32) {
    %c0_i32 = arith.constant 0 : i32
    %c0_i32_0 = arith.constant 0 : i32
    %c0_i32_1 = arith.constant 0 : i32
    return %c0_i32, %c0_i32_0 : i32, i32
  }
  func.func @transform_3(%arg0: i32) -> (i32, i32) {
    %c0_i32 = arith.constant 0 : i32
    %c0_i32_0 = arith.constant 0 : i32
    %c0_i32_1 = arith.constant 0 : i32
    return %c0_i32, %c0_i32_0 : i32, i32
  }
  func.func @transform_4(%arg0: i32) -> (i32, i32) {
    %c0_i32 = arith.constant 0 : i32
    %c0_i32_0 = arith.constant 0 : i32
    %c0_i32_1 = arith.constant 0 : i32
    return %c0_i32, %c0_i32_0 : i32, i32
  }
  func.func @transform_5(%arg0: i32) -> (i32, i32) {
    %c0_i32 = arith.constant 0 : i32
    %c0_i32_0 = arith.constant 0 : i32
    return %arg0, %c0_i32 : i32, i32
  }
}

</mosaic_0001>

<bundles_post_ra>
// kernel: tpu_custom_call.1
= control target key start
LH: loop header
LB: loop body
LE: loop exit
PB: predicated region body
PF: predicated region fallthrough
CT: control target
= control target key end

     0   :  { %10 = vsyncpa [#allocation3], 0  ;;  %s652_s0 = inlined_call_operand.hbm [shape: f32[8,64], index: 0, kind: input, shape index: {}]   ;;  %s653_s1 = inlined_call_operand.hbm [shape: f32[8,8], index: 1, kind: input, shape index: {}]   ;;  %s654_s2 = inlined_call_operand.hbm [shape: f32[8,128], index: 2, kind: input, shape index: {}]   ;;  %s655_s3 = inlined_call_operand.hbm [shape: f32[64,512], index: 3, kind: input, shape index: {}]   ;;  %s656_s4 = inlined_call_operand.hbm [shape: f32[8,128], index: 4, kind: input, shape index: {}]   ;;  %s657_s5 = inlined_call_operand.hbm [shape: f32[8,128], index: 5, kind: output, shape index: {}]  }
   0x1   :  { %11 = vsyncpa [#allocation6], 0 }
   0x2   :  { %12 = vsyncpa [#allocation9], 0  ;;  %s30_s20 = sshll.u32 %s653_s1, 4  ;;  %s31_s20 = int_to_ptr.hbm [resolvable:$true] %s30_s20 }
   0x3   :  { %13 = vsyncpa [#allocation4], 0  ;;  %s572_s21 = smov [#allocation5]   ;;  %s51_s25 = sshll.u32 %s655_s3, 4  ;;  %s52_s25 = int_to_ptr.hbm [resolvable:$true] %s51_s25 }
   0x4   :  { %s32_s22 = sshll.u32 %s572_s21, 4  ;;  %s573_s26 = smov [#allocation8]   ;;  %s33_s22 = int_to_ptr.vmem [resolvable:$true] %s32_s22 }
   0x5   :  { %35 = dma.hbm_to_vmem [thread:$0]  %s31_s20, 128, %s33_s22, [#allocation6]  }
   0x6   :  { %s53_s27 = sshll.u32 %s573_s26, 4  ;;  %s574_s28 = smov 512   ;;  %s54_s27 = int_to_ptr.vmem [resolvable:$true] %s53_s27 }
   0x7   :  { %s575_s29 = smov 32   ;;  %s19_s1 = sshll.u32 %s652_s0, 4  ;;  %s20_s1 = int_to_ptr.hbm [resolvable:$true] %s19_s1 }
   0x8   :  { %59 = dma.hbm_to_vmem [thread:$0]  %s52_s25, 4096, %s54_s27, [#allocation9], %s574_s28, %s574_s28, %s575_s29  }
   0x9   :  { %s576_s7 = smov [#allocation2]   ;;  %s41_s3 = sshll.u32 %s654_s2, 4  ;;  %s42_s3 = int_to_ptr.hbm [resolvable:$true] %s41_s3 }
   0xa   :  { %s21_s8 = sshll.u32 %s576_s7, 4  ;;  %s577_s11 = smov [#allocation7]   ;;  %s22_s8 = int_to_ptr.vmem [resolvable:$true] %s21_s8 }
   0xb   :  { %24 = dma.hbm_to_vmem [thread:$0]  %s20_s1, 128, %s22_s8, [#allocation3]  }
   0xc   :  { %s43_s12 = sshll.u32 %s577_s11, 4  ;;  %s65_s15 = sshll.u32 %s656_s4, 4  ;;  %s44_s12 = int_to_ptr.vmem [resolvable:$true] %s43_s12  ;;  %s66_s15 = int_to_ptr.hbm [resolvable:$true] %s65_s15 }
   0xd   :  { %46 = dma.hbm_to_vmem [thread:$0]  %s42_s3, 128, %s44_s12, [#allocation6]  }
   0xe   :  { %s578_s0 = smov [#allocation10]  }
   0xf   :  { %s67_s16 = sshll.u32 %s578_s0, 4  ;;  %s68_s16 = int_to_ptr.vmem [resolvable:$true] %s67_s16 }
  0x10   :  { %70 = dma.hbm_to_vmem [thread:$0]  %s66_s15, 128, %s68_s16, [#allocation9]  }
  0x11   :  { %564 = dma.done.wait [#allocation3], 128  }
  0x12   :  { %565 = vsyncadd [#allocation3], 4294967168 }
  0x13   :  { %566 = dma.done.wait [#allocation6], 256  }
  0x14   :  { %567 = vsyncadd [#allocation6], 4294967040 }
  0x15   :  { %568 = dma.done.wait [#allocation9], 4224  }
  0x16   :  { %569 = vsyncadd [#allocation9], 4294963072  ;;  %v120_v0 = vld [vmem:[#allocation8 + $0xe0] sm:$0xff]  ;;  %v122_v2 = vld [vmem:[#allocation8 + $0xf0] sm:$0xff]  ;;  %vm124_vm0 = vcmask 523264   ;;  %vm210_vm1 = vcmask 64512  }
  0x17   :  { %v116_v1 = vld [vmem:[#allocation8 + $0xc0] sm:$0xff]  ;;  %136 = vmatpush.msra.mxu0 %v120_v0  ;;  %176 = vmatpush.msra.mxu2 %v122_v2  ;;  %v123_v3 = vld [vmem:[#allocation8 + $0xf8] sm:$0xff]  ;;  %v118_v4 = vld [vmem:[#allocation8 + $0xd0] sm:$0xff]  ;;  %s579_s2 = smov [#allocation11]   ;;  %s380_s19 = sshll.u32 %s657_s5, 4  ;;  %s381_s19 = int_to_ptr.hbm [resolvable:$true] %s380_s19 }
  0x18   :  { %196 = vmatpush.msra.mxu3 %v123_v3  ;;  %v112_v5 = vld [vmem:[#allocation8 + $0xa0] sm:$0xff]  ;;  %v119_v6 = vld [vmem:[#allocation8 + $0xd8] sm:$0xff]  ;;  %v114_v7 = vld [vmem:[#allocation8 + $0xb0] sm:$0xff]  ;;  %s378_s4 = sshll.u32 %s579_s2, 4  ;;  %s379_s4 = int_to_ptr.vmem [resolvable:$true] %s378_s4 }
  0x19   :  { %137 = vmatpush.msra.mxu0 %v116_v1  ;;  %177 = vmatpush.msra.mxu2 %v118_v4  ;;  %v115_v8 = vld [vmem:[#allocation8 + $0xb8] sm:$0xff]  ;;  %v121_v9 = vld [vmem:[#allocation8 + $0xe8] sm:$0xff]  ;;  %v108_v10 = vld [vmem:[#allocation8 + $0x80] sm:$0xff] }
  0x1a   :  { %197 = vmatpush.msra.mxu3 %v119_v6  ;;  %156 = vmatpush.msra.mxu1 %v121_v9  ;;  %v110_v11 = vld [vmem:[#allocation8 + $0x90] sm:$0xff]  ;;  %v111_v12 = vld [vmem:[#allocation8 + $0x98] sm:$0xff]  ;;  %v117_v13 = vld [vmem:[#allocation8 + $0xc8] sm:$0xff] }
  0x1b   :  { %138 = vmatpush.msra.mxu0 %v112_v5  ;;  %178 = vmatpush.msra.mxu2 %v114_v7  ;;  %v104_v14 = vld [vmem:[#allocation8 + $0x60] sm:$0xff]  ;;  %v106_v15 = vld [vmem:[#allocation8 + $0x70] sm:$0xff]  ;;  %v113_v16 = vld [vmem:[#allocation8 + $0xa8] sm:$0xff] }
  0x1c   :  { %198 = vmatpush.msra.mxu3 %v115_v8  ;;  %157 = vmatpush.msra.mxu1 %v117_v13  ;;  %v107_v17 = vld [vmem:[#allocation8 + $0x78] sm:$0xff]  ;;  %v109_v18 = vld [vmem:[#allocation8 + $0x88] sm:$0xff]  ;;  %v100_v19 = vld [vmem:[#allocation8 + $0x40] sm:$0xff] }
  0x1d   :  { %139 = vmatpush.msra.mxu0 %v108_v10  ;;  %179 = vmatpush.msra.mxu2 %v110_v11  ;;  %v102_v20 = vld [vmem:[#allocation8 + $0x50] sm:$0xff]  ;;  %v96_v21 = vld [vmem:[#allocation8 + $0x20] sm:$0xff]  ;;  %v103_v22 = vld [vmem:[#allocation8 + $0x58] sm:$0xff] }
  0x1e   :  { %199 = vmatpush.msra.mxu3 %v111_v12  ;;  %158 = vmatpush.msra.mxu1 %v113_v16  ;;  %v105_v23 = vld [vmem:[#allocation8 + $0x68] sm:$0xff]  ;;  %v92_v24 = vld [vmem:[#allocation8] sm:$0xff]  ;;  %v98_v25 = vld [vmem:[#allocation8 + $0x30] sm:$0xff] }
  0x1f   :  { %140 = vmatpush.msra.mxu0 %v104_v14  ;;  %180 = vmatpush.msra.mxu2 %v106_v15  ;;  %v99_v26 = vld [vmem:[#allocation8 + $0x38] sm:$0xff]  ;;  %v94_v27 = vld [vmem:[#allocation8 + $0x10] sm:$0xff]  ;;  %v91_v28 = vld [vmem:[#allocation2] sm:$0xff] }
  0x20   :  { %200 = vmatpush.msra.mxu3 %v107_v17  ;;  %159 = vmatpush.msra.mxu1 %v109_v18  ;;  %v95_v29 = vld [vmem:[#allocation8 + $0x18] sm:$0xff]  ;;  %v101_v30 = vld [vmem:[#allocation8 + $0x48] sm:$0xff]  ;;  %v208_v34 = vld [vmem:[#allocation5] sm:$0xff] }
  0x21   :  { %141 = vmatpush.msra.mxu0 %v100_v19  ;;  %181 = vmatpush.msra.mxu2 %v102_v20  ;;  %v209_v31 = vld [vmem:[#allocation7] sm:$0xff]  ;;  %v97_v32 = vld [vmem:[#allocation8 + $0x28] sm:$0xff]  ;;  %v405_v37 = vld [vmem:[#allocation10] ss:$0 sm:$0xff] }
  0x22   :  { %201 = vmatpush.msra.mxu3 %v103_v22  ;;  %160 = vmatpush.msra.mxu1 %v105_v23  ;;  %v93_v33 = vld [vmem:[#allocation8 + $0x8] sm:$0xff] }
  0x23   :  { %142 = vmatpush.msra.mxu0 %v96_v21  ;;  %182 = vmatpush.msra.mxu2 %v98_v25 }
  0x24   :  { %202 = vmatpush.msra.mxu3 %v99_v26  ;;  %161 = vmatpush.msra.mxu1 %v101_v30 }
  0x25   :  { %143 = vmatpush.msra.mxu0 %v92_v24  ;;  %183 = vmatpush.msra.mxu2 %v94_v27 }
  0x26   :  { %392 = vmatmul.msk.f32.vlgmr.msra.gmra.mxu0 %vm124_vm0, %v91_v28  ;;  %203 = vmatpush.msra.mxu3 %v95_v29 }
  0x27   :  { %229 = vmatpush.msrb.mxu0 %v209_v31  ;;  %394 = vmatmul.msk.f32.vlgmr.msra.gmra.mxu2 %vm124_vm0, %v91_v28 }
  0x28   :  { %395 = vmatmul.msk.f32.vlgmr.msra.gmra.mxu3 %vm124_vm0, %v91_v28  ;;  %162 = vmatpush.msra.mxu1 %v97_v32 }
  0x2a   :  { %163 = vmatpush.msra.mxu1 %v93_v33 }
  0x2b   :  { %393 = vmatmul.msk.f32.vlgmr.msra.gmra.mxu1 %vm124_vm0, %v91_v28 }
  0x2e   :  { %396 = vmatmul.msk.f32.vlgmr.msrb.gmra.mxu0 %vm210_vm1, %v208_v34 }
  0xa3   :  { %v145_v35 = vpop.f32.mrf.mxu0 }
  0xa8   :  { %v165_v43 = vpop.f32.mrf.mxu1 }
  0xaa   :  { %v185_v36 = vpop.f32.mrf.mxu2 }
  0xab   :  { %v231_v38 = vpop.f32.mrf.mxu0  ;;  %v205_v44 = vpop.f32.mrf.mxu3 }
  0xac   :  { %v306_v39 = vadd.f32 %v231_v38, %v185_v36  ;;  %v237_v40 = vadd.f32 %v231_v38, %v145_v35  ;;  %v339_v45 = vadd.f32 %v231_v38, %v205_v44  ;;  %v273_v46 = vadd.f32 %v231_v38, %v165_v43 }
  0xae   :  { %v307_v41 = vadd.f32 %v405_v37, %v306_v39  ;;  %v239_v42 = vadd.f32 %v405_v37, %v237_v40  ;;  %v340_v47 = vadd.f32 %v405_v37, %v339_v45  ;;  %v274_v48 = vadd.f32 %v405_v37, %v273_v46 }
  0xb0   :  { %308 = vadd.xlane.f32.xlu1 %v307_v41  ;;  %240 = vadd.xlane.f32.xlu0 %v239_v42 }
  0xb8   :  { %341 = vadd.xlane.f32.xlu1 %v340_v47  ;;  %275 = vadd.xlane.f32.xlu0 %v274_v48 }
 0x123   :  { %v309_v49 = vpop.xlane.xlu1 %308  ;;  %v241_v50 = vpop.xlane.xlu0 %240 }
 0x124   :  { %v310_v51 = vmul.f32 0.03125, %v309_v49  ;;  %v242_v52 = vmul.f32 0.03125, %v241_v50  ;;  %v406_v49 = vld [vmem:[#allocation10 + $0x1] ss:$0 sm:$0xff] }
 0x126   :  { %v629_v53 = vsub.f32 %v307_v41, %v310_v51  ;;  %v631_v54 = vsub.f32 %v239_v42, %v242_v52  ;;  %v247_v1 = vmul.f32 96.0, %v242_v52  ;;  %v315_v2 = vmul.f32 96.0, %v310_v51 }
 0x128   :  { %v312_v55 = vmul.f32 %v629_v53, %v629_v53  ;;  %v244_v56 = vmul.f32 %v631_v54, %v631_v54  ;;  %v248_v3 = vmul.f32 %v247_v1, %v242_v52  ;;  %v316_v4 = vmul.f32 %v315_v2, %v310_v51 }
 0x12a   :  { %313 = vadd.xlane.f32.xlu0 %v312_v55  ;;  %245 = vadd.xlane.f32.xlu2 %v244_v56 }
 0x12b   :  { %v342_v57 = vpop.xlane.xlu1 %341  ;;  %v276_v58 = vpop.xlane.xlu0 %275 }
 0x12c   :  { %v343_v59 = vmul.f32 0.03125, %v342_v57  ;;  %v277_v60 = vmul.f32 0.03125, %v276_v58 }
 0x12e   :  { %v637_v61 = vsub.f32 %v340_v47, %v343_v59  ;;  %v639_v62 = vsub.f32 %v274_v48, %v277_v60  ;;  %v348_v11 = vmul.f32 96.0, %v343_v59  ;;  %v282_v12 = vmul.f32 96.0, %v277_v60 }
 0x130   :  { %v345_v63 = vmul.f32 %v637_v61, %v637_v61  ;;  %v279_v0 = vmul.f32 %v639_v62, %v639_v62  ;;  %v349_v17 = vmul.f32 %v348_v11, %v343_v59  ;;  %v283_v19 = vmul.f32 %v282_v12, %v277_v60  ;;  %v407_v60 = vld [vmem:[#allocation10 + $0x2] ss:$0 sm:$0xff] }
 0x132   :  { %346 = vadd.xlane.f32.xlu1 %v345_v63  ;;  %280 = vadd.xlane.f32.xlu2 %v279_v0 }
 0x19d   :  { %v246_v5 = vpop.xlane.xlu2 %245  ;;  %v314_v6 = vpop.xlane.xlu0 %313 }
 0x19e   :  { %v249_v7 = vsub.f32 %v246_v5, %v248_v3  ;;  %v317_v8 = vsub.f32 %v314_v6, %v316_v4 }
 0x1a0   :  { %v250_v9 = vmul.f32 0.03125, %v249_v7  ;;  %v318_v10 = vmul.f32 0.03125, %v317_v8  ;;  %v408_v8 = vld [vmem:[#allocation10 + $0x3] ss:$0 sm:$0xff] }
 0x1a2   :  { %v251_v13 = vmax.f32 %v250_v9, 0.0  ;;  %v319_v14 = vmax.f32 %v318_v10, 0.0  ;;  %v409_v10 = vld [vmem:[#allocation10 + $0x4] ss:$0 sm:$0xff] }
 0x1a4   :  { %v252_v15 = vadd.f32 1e-05, %v251_v13  ;;  %v320_v16 = vadd.f32 1e-05, %v319_v14  ;;  %v410_v14 = vld [vmem:[#allocation10 + $0x5] ss:$0 sm:$0xff] }
 0x1a5   :  { %v347_v18 = vpop.xlane.xlu1 %346  ;;  %v281_v20 = vpop.xlane.xlu2 %280 }
 0x1a6   :  { %412 = vrsqrt.f32 %v252_v15  ;;  %v350_v21 = vsub.f32 %v347_v18, %v349_v17  ;;  %v284_v22 = vsub.f32 %v281_v20, %v283_v19  ;;  %vm259_vm4 = vweird.f32 %v252_v15  ;;  %v411_v18 = vld [vmem:[#allocation10 + $0x6] ss:$0 sm:$0xff] }
 0x1a7   :  { %414 = vrsqrt.f32 %v320_v16  ;;  %vm327_vm6 = vweird.f32 %v320_v16 }
 0x1a8   :  { %v351_v23 = vmul.f32 0.03125, %v350_v21  ;;  %v285_v24 = vmul.f32 0.03125, %v284_v22 }
 0x1aa   :  { %v352_v25 = vmax.f32 %v351_v23, 0.0  ;;  %v286_v26 = vmax.f32 %v285_v24, 0.0 }
 0x1ac   :  { %v413_v27 = vpop.eup %412  ;;  %v353_v28 = vadd.f32 1e-05, %v352_v25  ;;  %v287_v31 = vadd.f32 1e-05, %v286_v26 }
 0x1ad   :  { %v415_v29 = vpop.eup %414  ;;  %v254_v30 = vmul.f32 %v413_v27, %v252_v15  ;;  %vm260_vm2 = vweird.f32 %v413_v27 }
 0x1ae   :  { %v322_v32 = vmul.f32 %v415_v29, %v320_v16  ;;  %416 = vrsqrt.f32 %v353_v28  ;;  %vm328_vm3 = vweird.f32 %v415_v29  ;;  %vm261_vm5 = vmor %vm259_vm4, %vm260_vm2  ;;  %vm360_vm10 = vweird.f32 %v353_v28 }
 0x1af   :  { %v255_v33 = vmul.f32 %v413_v27, %v254_v30  ;;  %418 = vrsqrt.f32 %v287_v31  ;;  %vm329_vm7 = vmor %vm327_vm6, %vm328_vm3  ;;  %vm294_vm12 = vweird.f32 %v287_v31 }
 0x1b0   :  { %v323_v34 = vmul.f32 %v415_v29, %v322_v32 }
 0x1b1   :  { %v256_v35 = vmul.f32 0.5, %v255_v33 }
 0x1b2   :  { %v324_v36 = vmul.f32 0.5, %v323_v34 }
 0x1b3   :  { %v257_v37 = vsub.f32 1.5, %v256_v35 }
 0x1b4   :  { %v417_v38 = vpop.eup %416  ;;  %v325_v39 = vsub.f32 1.5, %v324_v36 }
 0x1b5   :  { %v419_v40 = vpop.eup %418  ;;  %v258_v41 = vmul.f32 %v413_v27, %v257_v37  ;;  %v355_v42 = vmul.f32 %v417_v38, %v353_v28  ;;  %vm361_vm8 = vweird.f32 %v417_v38 }
 0x1b6   :  { %v326_v43 = vmul.f32 %v415_v29, %v325_v39  ;;  %v289_v44 = vmul.f32 %v419_v40, %v287_v31  ;;  %vm295_vm9 = vweird.f32 %v419_v40  ;;  %vm362_vm11 = vmor %vm360_vm10, %vm361_vm8 }
 0x1b7   :  { %v262_v45 = vsel %vm261_vm5, %v413_v27, %v258_v41  ;;  %v356_v46 = vmul.f32 %v417_v38, %v355_v42  ;;  %vm296_vm13 = vmor %vm294_vm12, %vm295_vm9 }
 0x1b8   :  { %v330_v47 = vsel %vm329_vm7, %v415_v29, %v326_v43  ;;  %v290_v48 = vmul.f32 %v419_v40, %v289_v44  ;;  %v263_v50 = vmul.f32 %v262_v45, %v631_v54 }
 0x1b9   :  { %v357_v51 = vmul.f32 0.5, %v356_v46  ;;  %v331_v55 = vmul.f32 %v330_v47, %v629_v53 }
 0x1ba   :  { %v291_v52 = vmul.f32 0.5, %v290_v48  ;;  %v265_v58 = vmul.f32 %v406_v49, %v263_v50 }
 0x1bb   :  { %v358_v56 = vsub.f32 1.5, %v357_v51  ;;  %v332_v0 = vmul.f32 %v406_v49, %v331_v55 }
 0x1bc   :  { %v292_v57 = vsub.f32 1.5, %v291_v52  ;;  %v267_v53 = vadd.f32 %v407_v60, %v265_v58 }
 0x1bd   :  { %v359_v59 = vmul.f32 %v417_v38, %v358_v56  ;;  %v333_v6 = vadd.f32 %v407_v60, %v332_v0 }
 0x1be   :  { %v293_v63 = vmul.f32 %v419_v40, %v292_v57  ;;  %v268_v7 = vmax.f32 %v267_v53, 0.0 }
 0x1bf   :  { %v363_v1 = vsel %vm362_vm11, %v417_v38, %v359_v59  ;;  %v334_v13 = vmax.f32 %v333_v6, 0.0 }
 0x1c0   :  { %v364_v54 = vmul.f32 %v363_v1, %v637_v61  ;;  %v297_v2 = vsel %vm296_vm13, %v419_v40, %v293_v63  ;;  %v271_v15 = vmul.f32 %v408_v8, %v268_v7 }
 0x1c1   :  { %v298_v3 = vmul.f32 %v297_v2, %v639_v62  ;;  %v337_v19 = vmul.f32 %v410_v14, %v334_v13 }
 0x1c2   :  { %v365_v4 = vmul.f32 %v406_v49, %v364_v54 }
 0x1c3   :  { %v299_v5 = vmul.f32 %v406_v49, %v298_v3 }
 0x1c4   :  { %v366_v11 = vadd.f32 %v407_v60, %v365_v4 }
 0x1c5   :  { %v300_v9 = vadd.f32 %v407_v60, %v299_v5 }
 0x1c6   :  { %v367_v17 = vmax.f32 %v366_v11, 0.0 }
 0x1c7   :  { %v301_v12 = vmax.f32 %v300_v9, 0.0 }
 0x1c8   :  { %v370_v20 = vmul.f32 %v411_v18, %v367_v17 }
 0x1c9   :  { %v304_v16 = vmul.f32 %v409_v10, %v301_v12 }
 0x1cb   :  { %v305_v61 = vadd.f32 %v304_v16, %v271_v15 }
 0x1cd   :  { %v338_v62 = vadd.f32 %v337_v19, %v305_v61 }
 0x1cf   :  { %v371_v21 = vadd.f32 %v370_v20, %v338_v62 }
 0x1d1   :  { %372 = vst [vmem:[#allocation11] sm:$0xff] %v371_v21 }
 0x1d2   :  { %383 = dma.vmem_to_hbm [thread:$0]  %s379_s4, 128, %s381_s19, [#allocation4]  }
 0x1d3   :  { %570 = dma.done.wait [#allocation4], 128  }
 0x1d4   :  { %571 = vsyncadd [#allocation4], 4294967168 }
 0x1d5   :  { %388 = vsyncpa [#allocation3], 1 }
 0x1d6   :  { %389 = vsyncpa [#allocation6], 1 }
 0x1d7   :  { %390 = vsyncpa [#allocation9], 1 }
 0x1d8   :  { %391 = vsyncpa [#allocation4], 1 }

// kernel: tpu_custom_call.1
= control target key start
LH: loop header
LB: loop body
LE: loop exit
PB: predicated region body
PF: predicated region fallthrough
CT: control target
= control target key end

     0   :  { %10 = vsyncpa [#allocation3], 0  ;;  %s652_s0 = inlined_call_operand.hbm [shape: f32[8,64], index: 0, kind: input, shape index: {}]   ;;  %s653_s1 = inlined_call_operand.hbm [shape: f32[8,8], index: 1, kind: input, shape index: {}]   ;;  %s654_s2 = inlined_call_operand.hbm [shape: f32[8,128], index: 2, kind: input, shape index: {}]   ;;  %s655_s3 = inlined_call_operand.hbm [shape: f32[64,512], index: 3, kind: input, shape index: {}]   ;;  %s656_s4 = inlined_call_operand.hbm [shape: f32[8,128], index: 4, kind: input, shape index: {}]   ;;  %s657_s5 = inlined_call_operand.hbm [shape: f32[8,128], index: 5, kind: output, shape index: {}]  }
   0x1   :  { %11 = vsyncpa [#allocation6], 0 }
   0x2   :  { %12 = vsyncpa [#allocation9], 0  ;;  %s30_s20 = sshll.u32 %s653_s1, 4  ;;  %s31_s20 = int_to_ptr.hbm [resolvable:$true] %s30_s20 }
   0x3   :  { %13 = vsyncpa [#allocation4], 0  ;;  %s572_s21 = smov [#allocation5]   ;;  %s51_s25 = sshll.u32 %s655_s3, 4  ;;  %s52_s25 = int_to_ptr.hbm [resolvable:$true] %s51_s25 }
   0x4   :  { %s32_s22 = sshll.u32 %s572_s21, 4  ;;  %s573_s26 = smov [#allocation8]   ;;  %s33_s22 = int_to_ptr.vmem [resolvable:$true] %s32_s22 }
   0x5   :  { %35 = dma.hbm_to_vmem [thread:$0]  %s31_s20, 128, %s33_s22, [#allocation6]  }
   0x6   :  { %s53_s27 = sshll.u32 %s573_s26, 4  ;;  %s574_s28 = smov 512   ;;  %s54_s27 = int_to_ptr.vmem [resolvable:$true] %s53_s27 }
   0x7   :  { %s575_s29 = smov 32   ;;  %s19_s1 = sshll.u32 %s652_s0, 4  ;;  %s20_s1 = int_to_ptr.hbm [resolvable:$true] %s19_s1 }
   0x8   :  { %59 = dma.hbm_to_vmem [thread:$0]  %s52_s25, 4096, %s54_s27, [#allocation9], %s574_s28, %s574_s28, %s575_s29  }
   0x9   :  { %s576_s7 = smov [#allocation2]   ;;  %s41_s3 = sshll.u32 %s654_s2, 4  ;;  %s42_s3 = int_to_ptr.hbm [resolvable:$true] %s41_s3 }
   0xa   :  { %s21_s8 = sshll.u32 %s576_s7, 4  ;;  %s577_s11 = smov [#allocation7]   ;;  %s22_s8 = int_to_ptr.vmem [resolvable:$true] %s21_s8 }
   0xb   :  { %24 = dma.hbm_to_vmem [thread:$0]  %s20_s1, 128, %s22_s8, [#allocation3]  }
   0xc   :  { %s43_s12 = sshll.u32 %s577_s11, 4  ;;  %s65_s15 = sshll.u32 %s656_s4, 4  ;;  %s44_s12 = int_to_ptr.vmem [resolvable:$true] %s43_s12  ;;  %s66_s15 = int_to_ptr.hbm [resolvable:$true] %s65_s15 }
   0xd   :  { %46 = dma.hbm_to_vmem [thread:$0]  %s42_s3, 128, %s44_s12, [#allocation6]  }
   0xe   :  { %s578_s0 = smov [#allocation10]  }
   0xf   :  { %s67_s16 = sshll.u32 %s578_s0, 4  ;;  %s68_s16 = int_to_ptr.vmem [resolvable:$true] %s67_s16 }
  0x10   :  { %70 = dma.hbm_to_vmem [thread:$0]  %s66_s15, 128, %s68_s16, [#allocation9]  }
  0x11   :  { %564 = dma.done.wait [#allocation3], 128  }
  0x12   :  { %565 = vsyncadd [#allocation3], 4294967168 }
  0x13   :  { %566 = dma.done.wait [#allocation6], 256  }
  0x14   :  { %567 = vsyncadd [#allocation6], 4294967040 }
  0x15   :  { %568 = dma.done.wait [#allocation9], 4224  }
  0x16   :  { %569 = vsyncadd [#allocation9], 4294963072  ;;  %v120_v0 = vld [vmem:[#allocation8 + $0xe0] sm:$0xff]  ;;  %v122_v2 = vld [vmem:[#allocation8 + $0xf0] sm:$0xff]  ;;  %vm124_vm0 = vcmask 523264   ;;  %vm210_vm1 = vcmask 64512  }
  0x17   :  { %v116_v1 = vld [vmem:[#allocation8 + $0xc0] sm:$0xff]  ;;  %136 = vmatpush.msra.mxu0 %v120_v0  ;;  %176 = vmatpush.msra.mxu2 %v122_v2  ;;  %v123_v3 = vld [vmem:[#allocation8 + $0xf8] sm:$0xff]  ;;  %v118_v4 = vld [vmem:[#allocation8 + $0xd0] sm:$0xff]  ;;  %s579_s2 = smov [#allocation11]   ;;  %s380_s19 = sshll.u32 %s657_s5, 4  ;;  %s381_s19 = int_to_ptr.hbm [resolvable:$true] %s380_s19 }
  0x18   :  { %196 = vmatpush.msra.mxu3 %v123_v3  ;;  %v112_v5 = vld [vmem:[#allocation8 + $0xa0] sm:$0xff]  ;;  %v119_v6 = vld [vmem:[#allocation8 + $0xd8] sm:$0xff]  ;;  %v114_v7 = vld [vmem:[#allocation8 + $0xb0] sm:$0xff]  ;;  %s378_s4 = sshll.u32 %s579_s2, 4  ;;  %s379_s4 = int_to_ptr.vmem [resolvable:$true] %s378_s4 }
  0x19   :  { %137 = vmatpush.msra.mxu0 %v116_v1  ;;  %177 = vmatpush.msra.mxu2 %v118_v4  ;;  %v115_v8 = vld [vmem:[#allocation8 + $0xb8] sm:$0xff]  ;;  %v121_v9 = vld [vmem:[#allocation8 + $0xe8] sm:$0xff]  ;;  %v108_v10 = vld [vmem:[#allocation8 + $0x80] sm:$0xff] }
  0x1a   :  { %197 = vmatpush.msra.mxu3 %v119_v6  ;;  %156 = vmatpush.msra.mxu1 %v121_v9  ;;  %v110_v11 = vld [vmem:[#allocation8 + $0x90] sm:$0xff]  ;;  %v111_v12 = vld [vmem:[#allocation8 + $0x98] sm:$0xff]  ;;  %v117_v13 = vld [vmem:[#allocation8 + $0xc8] sm:$0xff] }
  0x1b   :  { %138 = vmatpush.msra.mxu0 %v112_v5  ;;  %178 = vmatpush.msra.mxu2 %v114_v7  ;;  %v104_v14 = vld [vmem:[#allocation8 + $0x60] sm:$0xff]  ;;  %v106_v15 = vld [vmem:[#allocation8 + $0x70] sm:$0xff]  ;;  %v113_v16 = vld [vmem:[#allocation8 + $0xa8] sm:$0xff] }
  0x1c   :  { %198 = vmatpush.msra.mxu3 %v115_v8  ;;  %157 = vmatpush.msra.mxu1 %v117_v13  ;;  %v107_v17 = vld [vmem:[#allocation8 + $0x78] sm:$0xff]  ;;  %v109_v18 = vld [vmem:[#allocation8 + $0x88] sm:$0xff]  ;;  %v100_v19 = vld [vmem:[#allocation8 + $0x40] sm:$0xff] }
  0x1d   :  { %139 = vmatpush.msra.mxu0 %v108_v10  ;;  %179 = vmatpush.msra.mxu2 %v110_v11  ;;  %v102_v20 = vld [vmem:[#allocation8 + $0x50] sm:$0xff]  ;;  %v96_v21 = vld [vmem:[#allocation8 + $0x20] sm:$0xff]  ;;  %v103_v22 = vld [vmem:[#allocation8 + $0x58] sm:$0xff] }
  0x1e   :  { %199 = vmatpush.msra.mxu3 %v111_v12  ;;  %158 = vmatpush.msra.mxu1 %v113_v16  ;;  %v105_v23 = vld [vmem:[#allocation8 + $0x68] sm:$0xff]  ;;  %v92_v24 = vld [vmem:[#allocation8] sm:$0xff]  ;;  %v98_v25 = vld [vmem:[#allocation8 + $0x30] sm:$0xff] }
  0x1f   :  { %140 = vmatpush.msra.mxu0 %v104_v14  ;;  %180 = vmatpush.msra.mxu2 %v106_v15  ;;  %v99_v26 = vld [vmem:[#allocation8 + $0x38] sm:$0xff]  ;;  %v94_v27 = vld [vmem:[#allocation8 + $0x10] sm:$0xff]  ;;  %v91_v28 = vld [vmem:[#allocation2] sm:$0xff] }
  0x20   :  { %200 = vmatpush.msra.mxu3 %v107_v17  ;;  %159 = vmatpush.msra.mxu1 %v109_v18  ;;  %v95_v29 = vld [vmem:[#allocation8 + $0x18] sm:$0xff]  ;;  %v101_v30 = vld [vmem:[#allocation8 + $0x48] sm:$0xff]  ;;  %v208_v34 = vld [vmem:[#allocation5] sm:$0xff] }
  0x21   :  { %141 = vmatpush.msra.mxu0 %v100_v19  ;;  %181 = vmatpush.msra.mxu2 %v102_v20  ;;  %v209_v31 = vld [vmem:[#allocation7] sm:$0xff]  ;;  %v97_v32 = vld [vmem:[#allocation8 + $0x28] sm:$0xff]  ;;  %v405_v37 = vld [vmem:[#allocation10] ss:$0 sm:$0xff] }
  0x22   :  { %201 = vmatpush.msra.mxu3 %v103_v22  ;;  %160 = vmatpush.msra.mxu1 %v105_v23  ;;  %v93_v33 = vld [vmem:[#allocation8 + $0x8] sm:$0xff] }
  0x23   :  { %142 = vmatpush.msra.mxu0 %v96_v21  ;;  %182 = vmatpush.msra.mxu2 %v98_v25 }
  0x24   :  { %202 = vmatpush.msra.mxu3 %v99_v26  ;;  %161 = vmatpush.msra.mxu1 %v101_v30 }
  0x25   :  { %143 = vmatpush.msra.mxu0 %v92_v24  ;;  %183 = vmatpush.msra.mxu2 %v94_v27 }
  0x26   :  { %392 = vmatmul.msk.f32.vlgmr.msra.gmra.mxu0 %vm124_vm0, %v91_v28  ;;  %203 = vmatpush.msra.mxu3 %v95_v29 }
  0x27   :  { %229 = vmatpush.msrb.mxu0 %v209_v31  ;;  %394 = vmatmul.msk.f32.vlgmr.msra.gmra.mxu2 %vm124_vm0, %v91_v28 }
  0x28   :  { %395 = vmatmul.msk.f32.vlgmr.msra.gmra.mxu3 %vm124_vm0, %v91_v28  ;;  %162 = vmatpush.msra.mxu1 %v97_v32 }
  0x2a   :  { %163 = vmatpush.msra.mxu1 %v93_v33 }
  0x2b   :  { %393 = vmatmul.msk.f32.vlgmr.msra.gmra.mxu1 %vm124_vm0, %v91_v28 }
  0x2e   :  { %396 = vmatmul.msk.f32.vlgmr.msrb.gmra.mxu0 %vm210_vm1, %v208_v34 }
  0xa3   :  { %v145_v35 = vpop.f32.mrf.mxu0 }
  0xa8   :  { %v165_v43 = vpop.f32.mrf.mxu1 }
  0xaa   :  { %v185_v36 = vpop.f32.mrf.mxu2 }
  0xab   :  { %v231_v38 = vpop.f32.mrf.mxu0  ;;  %v205_v44 = vpop.f32.mrf.mxu3 }
  0xac   :  { %v306_v39 = vadd.f32 %v231_v38, %v185_v36  ;;  %v237_v40 = vadd.f32 %v231_v38, %v145_v35  ;;  %v339_v45 = vadd.f32 %v231_v38, %v205_v44  ;;  %v273_v46 = vadd.f32 %v231_v38, %v165_v43 }
  0xae   :  { %v307_v41 = vadd.f32 %v405_v37, %v306_v39  ;;  %v239_v42 = vadd.f32 %v405_v37, %v237_v40  ;;  %v340_v47 = vadd.f32 %v405_v37, %v339_v45  ;;  %v274_v48 = vadd.f32 %v405_v37, %v273_v46 }
  0xb0   :  { %308 = vadd.xlane.f32.xlu1 %v307_v41  ;;  %240 = vadd.xlane.f32.xlu0 %v239_v42 }
  0xb8   :  { %341 = vadd.xlane.f32.xlu1 %v340_v47  ;;  %275 = vadd.xlane.f32.xlu0 %v274_v48 }
 0x123   :  { %v309_v49 = vpop.xlane.xlu1 %308  ;;  %v241_v50 = vpop.xlane.xlu0 %240 }
 0x124   :  { %v310_v51 = vmul.f32 0.03125, %v309_v49  ;;  %v242_v52 = vmul.f32 0.03125, %v241_v50  ;;  %v406_v49 = vld [vmem:[#allocation10 + $0x1] ss:$0 sm:$0xff] }
 0x126   :  { %v629_v53 = vsub.f32 %v307_v41, %v310_v51  ;;  %v631_v54 = vsub.f32 %v239_v42, %v242_v52  ;;  %v247_v1 = vmul.f32 96.0, %v242_v52  ;;  %v315_v2 = vmul.f32 96.0, %v310_v51 }
 0x128   :  { %v312_v55 = vmul.f32 %v629_v53, %v629_v53  ;;  %v244_v56 = vmul.f32 %v631_v54, %v631_v54  ;;  %v248_v3 = vmul.f32 %v247_v1, %v242_v52  ;;  %v316_v4 = vmul.f32 %v315_v2, %v310_v51 }
 0x12a   :  { %313 = vadd.xlane.f32.xlu0 %v312_v55  ;;  %245 = vadd.xlane.f32.xlu2 %v244_v56 }
 0x12b   :  { %v342_v57 = vpop.xlane.xlu1 %341  ;;  %v276_v58 = vpop.xlane.xlu0 %275 }
 0x12c   :  { %v343_v59 = vmul.f32 0.03125, %v342_v57  ;;  %v277_v60 = vmul.f32 0.03125, %v276_v58 }
 0x12e   :  { %v637_v61 = vsub.f32 %v340_v47, %v343_v59  ;;  %v639_v62 = vsub.f32 %v274_v48, %v277_v60  ;;  %v348_v11 = vmul.f32 96.0, %v343_v59  ;;  %v282_v12 = vmul.f32 96.0, %v277_v60 }
 0x130   :  { %v345_v63 = vmul.f32 %v637_v61, %v637_v61  ;;  %v279_v0 = vmul.f32 %v639_v62, %v639_v62  ;;  %v349_v17 = vmul.f32 %v348_v11, %v343_v59  ;;  %v283_v19 = vmul.f32 %v282_v12, %v277_v60  ;;  %v407_v60 = vld [vmem:[#allocation10 + $0x2] ss:$0 sm:$0xff] }
 0x132   :  { %346 = vadd.xlane.f32.xlu1 %v345_v63  ;;  %280 = vadd.xlane.f32.xlu2 %v279_v0 }
 0x19d   :  { %v246_v5 = vpop.xlane.xlu2 %245  ;;  %v314_v6 = vpop.xlane.xlu0 %313 }
 0x19e   :  { %v249_v7 = vsub.f32 %v246_v5, %v248_v3  ;;  %v317_v8 = vsub.f32 %v314_v6, %v316_v4 }
 0x1a0   :  { %v250_v9 = vmul.f32 0.03125, %v249_v7  ;;  %v318_v10 = vmul.f32 0.03125, %v317_v8  ;;  %v408_v8 = vld [vmem:[#allocation10 + $0x3] ss:$0 sm:$0xff] }
 0x1a2   :  { %v251_v13 = vmax.f32 %v250_v9, 0.0  ;;  %v319_v14 = vmax.f32 %v318_v10, 0.0  ;;  %v409_v10 = vld [vmem:[#allocation10 + $0x4] ss:$0 sm:$0xff] }
 0x1a4   :  { %v252_v15 = vadd.f32 1e-05, %v251_v13  ;;  %v320_v16 = vadd.f32 1e-05, %v319_v14  ;;  %v410_v14 = vld [vmem:[#allocation10 + $0x5] ss:$0 sm:$0xff] }
 0x1a5   :  { %v347_v18 = vpop.xlane.xlu1 %346  ;;  %v281_v20 = vpop.xlane.xlu2 %280 }
 0x1a6   :  { %412 = vrsqrt.f32 %v252_v15  ;;  %v350_v21 = vsub.f32 %v347_v18, %v349_v17  ;;  %v284_v22 = vsub.f32 %v281_v20, %v283_v19  ;;  %vm259_vm4 = vweird.f32 %v252_v15  ;;  %v411_v18 = vld [vmem:[#allocation10 + $0x6] ss:$0 sm:$0xff] }
 0x1a7   :  { %414 = vrsqrt.f32 %v320_v16  ;;  %vm327_vm6 = vweird.f32 %v320_v16 }
 0x1a8   :  { %v351_v23 = vmul.f32 0.03125, %v350_v21  ;;  %v285_v24 = vmul.f32 0.03125, %v284_v22 }
 0x1aa   :  { %v352_v25 = vmax.f32 %v351_v23, 0.0  ;;  %v286_v26 = vmax.f32 %v285_v24, 0.0 }
 0x1ac   :  { %v413_v27 = vpop.eup %412  ;;  %v353_v28 = vadd.f32 1e-05, %v352_v25  ;;  %v287_v31 = vadd.f32 1e-05, %v286_v26 }
 0x1ad   :  { %v415_v29 = vpop.eup %414  ;;  %v254_v30 = vmul.f32 %v413_v27, %v252_v15  ;;  %vm260_vm2 = vweird.f32 %v413_v27 }
 0x1ae   :  { %v322_v32 = vmul.f32 %v415_v29, %v320_v16  ;;  %416 = vrsqrt.f32 %v353_v28  ;;  %vm328_vm3 = vweird.f32 %v415_v29  ;;  %vm261_vm5 = vmor %vm259_vm4, %vm260_vm2  ;;  %vm360_vm10 = vweird.f32 %v353_v28 }
 0x1af   :  { %v255_v33 = vmul.f32 %v413_v27, %v254_v30  ;;  %418 = vrsqrt.f32 %v287_v31  ;;  %vm329_vm7 = vmor %vm327_vm6, %vm328_vm3  ;;  %vm294_vm12 = vweird.f32 %v287_v31 }
 0x1b0   :  { %v323_v34 = vmul.f32 %v415_v29, %v322_v32 }
 0x1b1   :  { %v256_v35 = vmul.f32 0.5, %v255_v33 }
 0x1b2   :  { %v324_v36 = vmul.f32 0.5, %v323_v34 }
 0x1b3   :  { %v257_v37 = vsub.f32 1.5, %v256_v35 }
 0x1b4   :  { %v417_v38 = vpop.eup %416  ;;  %v325_v39 = vsub.f32 1.5, %v324_v36 }
 0x1b5   :  { %v419_v40 = vpop.eup %418  ;;  %v258_v41 = vmul.f32 %v413_v27, %v257_v37  ;;  %v355_v42 = vmul.f32 %v417_v38, %v353_v28  ;;  %vm361_vm8 = vweird.f32 %v417_v38 }
 0x1b6   :  { %v326_v43 = vmul.f32 %v415_v29, %v325_v39  ;;  %v289_v44 = vmul.f32 %v419_v40, %v287_v31  ;;  %vm295_vm9 = vweird.f32 %v419_v40  ;;  %vm362_vm11 = vmor %vm360_vm10, %vm361_vm8 }
 0x1b7   :  { %v262_v45 = vsel %vm261_vm5, %v413_v27, %v258_v41  ;;  %v356_v46 = vmul.f32 %v417_v38, %v355_v42  ;;  %vm296_vm13 = vmor %vm294_vm12, %vm295_vm9 }
 0x1b8   :  { %v330_v47 = vsel %vm329_vm7, %v415_v29, %v326_v43  ;;  %v290_v48 = vmul.f32 %v419_v40, %v289_v44  ;;  %v263_v50 = vmul.f32 %v262_v45, %v631_v54 }
 0x1b9   :  { %v357_v51 = vmul.f32 0.5, %v356_v46  ;;  %v331_v55 = vmul.f32 %v330_v47, %v629_v53 }
 0x1ba   :  { %v291_v52 = vmul.f32 0.5, %v290_v48  ;;  %v265_v58 = vmul.f32 %v406_v49, %v263_v50 }
 0x1bb   :  { %v358_v56 = vsub.f32 1.5, %v357_v51  ;;  %v332_v0 = vmul.f32 %v406_v49, %v331_v55 }
 0x1bc   :  { %v292_v57 = vsub.f32 1.5, %v291_v52  ;;  %v267_v53 = vadd.f32 %v407_v60, %v265_v58 }
 0x1bd   :  { %v359_v59 = vmul.f32 %v417_v38, %v358_v56  ;;  %v333_v6 = vadd.f32 %v407_v60, %v332_v0 }
 0x1be   :  { %v293_v63 = vmul.f32 %v419_v40, %v292_v57  ;;  %v268_v7 = vmax.f32 %v267_v53, 0.0 }
 0x1bf   :  { %v363_v1 = vsel %vm362_vm11, %v417_v38, %v359_v59  ;;  %v334_v13 = vmax.f32 %v333_v6, 0.0 }
 0x1c0   :  { %v364_v54 = vmul.f32 %v363_v1, %v637_v61  ;;  %v297_v2 = vsel %vm296_vm13, %v419_v40, %v293_v63  ;;  %v271_v15 = vmul.f32 %v408_v8, %v268_v7 }
 0x1c1   :  { %v298_v3 = vmul.f32 %v297_v2, %v639_v62  ;;  %v337_v19 = vmul.f32 %v410_v14, %v334_v13 }
 0x1c2   :  { %v365_v4 = vmul.f32 %v406_v49, %v364_v54 }
 0x1c3   :  { %v299_v5 = vmul.f32 %v406_v49, %v298_v3 }
 0x1c4   :  { %v366_v11 = vadd.f32 %v407_v60, %v365_v4 }
 0x1c5   :  { %v300_v9 = vadd.f32 %v407_v60, %v299_v5 }
 0x1c6   :  { %v367_v17 = vmax.f32 %v366_v11, 0.0 }
 0x1c7   :  { %v301_v12 = vmax.f32 %v300_v9, 0.0 }
 0x1c8   :  { %v370_v20 = vmul.f32 %v411_v18, %v367_v17 }
 0x1c9   :  { %v304_v16 = vmul.f32 %v409_v10, %v301_v12 }
 0x1cb   :  { %v305_v61 = vadd.f32 %v304_v16, %v271_v15 }
 0x1cd   :  { %v338_v62 = vadd.f32 %v337_v19, %v305_v61 }
 0x1cf   :  { %v371_v21 = vadd.f32 %v370_v20, %v338_v62 }
 0x1d1   :  { %372 = vst [vmem:[#allocation11] sm:$0xff] %v371_v21 }
 0x1d2   :  { %383 = dma.vmem_to_hbm [thread:$0]  %s379_s4, 128, %s381_s19, [#allocation4]  }
 0x1d3   :  { %570 = dma.done.wait [#allocation4], 128  }
 0x1d4   :  { %571 = vsyncadd [#allocation4], 4294967168 }
 0x1d5   :  { %388 = vsyncpa [#allocation3], 1 }
 0x1d6   :  { %389 = vsyncpa [#allocation6], 1 }
 0x1d7   :  { %390 = vsyncpa [#allocation9], 1 }
 0x1d8   :  { %391 = vsyncpa [#allocation4], 1 }

</bundles_post_ra>
